<compile_context>
chip_gen: v7x
topology: tpu7x:2x2x1
jax: 0.10.0
libtpu: 0.0.40
codegen_flags: <defaults>
</compile_context>

<pallas_src>
import functools

import numpy as np
import jax
import jax.numpy as jnp
from jax.experimental import pallas as pl
from jax.experimental.pallas import tpu as pltpu


# --------------------------------------------------------------------------
# Model configuration (synthesized).
# --------------------------------------------------------------------------
B = 2
C_IN, H0, W0 = 4, 16, 16
C1, C2, C3 = 8, 16, 32
H1, W1 = H0 // 2, W0 // 2            # after pool1: 8 x 8
H2, W2 = H1 // 2, W1 // 2            # after pool2: 4 x 4
SEQ = W2                             # conv3 (4x1) collapses H -> 1, seq = W = 4
FC1, NUM_CLASSES = 64, 10
OUT_LANES = 128                      # lane-dense kernel output (logits in [:SEQ*NUM_CLASSES])


def init_params(key):
    ks = jax.random.split(key, 10)
    return {
        "conv1_w": 0.1 * jax.random.normal(ks[0], (C1, C_IN, 3, 3), jnp.float32),
        "conv1_b": 0.1 * jax.random.normal(ks[1], (C1,), jnp.float32),
        "conv2_w": 0.1 * jax.random.normal(ks[2], (C2, C1, 3, 3), jnp.float32),
        "conv2_b": 0.1 * jax.random.normal(ks[3], (C2,), jnp.float32),
        "conv3_w": 0.1 * jax.random.normal(ks[4], (C3, C2, 4, 1), jnp.float32),
        "conv3_b": 0.1 * jax.random.normal(ks[5], (C3,), jnp.float32),
        "fc1_w": 0.1 * jax.random.normal(ks[6], (C3, FC1), jnp.float32),
        "fc1_b": 0.1 * jax.random.normal(ks[7], (FC1,), jnp.float32),
        "fc2_w": 0.1 * jax.random.normal(ks[8], (FC1, NUM_CLASSES), jnp.float32),
        "fc2_b": 0.1 * jax.random.normal(ks[9], (NUM_CLASSES,), jnp.float32),
    }


# --------------------------------------------------------------------------
# One-time weight packing: turn convs / pools / fcs into 2-D matmul operands.
# Activation layout everywhere: rows = (batch, height), lanes = (width, chan).
# --------------------------------------------------------------------------
def _shift_matrix(n_out, n_in, offset):
    """M[o, i] = 1 iff i == o + offset (out-of-range stays 0 => zero padding)."""
    m = np.zeros((n_out, n_in), np.float32)
    for o in range(n_out):
        i = o + offset
        if 0 <= i < n_in:
            m[o, i] = 1.0
    return m


def _row_shift(batch, h_out, h_in, offset):
    """Block-diagonal-over-batch row selector for a conv H-offset (zero pad)."""
    return np.kron(np.eye(batch, dtype=np.float32), _shift_matrix(h_out, h_in, offset))


def _row_pool(batch, h_in, dh):
    """Selects rows 2*ho + dh (block-diagonal over batch) for 2x2 max pooling."""
    h_out = h_in // 2
    m = np.zeros((h_out, h_in), np.float32)
    for ho in range(h_out):
        m[ho, 2 * ho + dh] = 1.0
    return np.kron(np.eye(batch, dtype=np.float32), m)


def _col_pool(w_in, c, dw):
    """Selects lane chunk (2*wo + dw)*c..+c, i.e. W-pooling on (w, c) lanes."""
    w_out = w_in // 2
    m = np.zeros((w_in, w_out), np.float32)
    for wo in range(w_out):
        m[2 * wo + dw, wo] = 1.0
    return np.kron(m, np.eye(c, dtype=np.float32))


def _conv_lane_weights_summed(w, w_in, w_out, pad):
    """Per kernel H-offset i: G_i = sum_j kron(shift(j-pad).T, w[:,:,i,j].T).

    One matmul per H-offset == W-shift + zero-pad + channel mix, with the sum
    over kernel-width offsets folded into the weight (linear in the operand).
    Returns (kh, w_in*Cin, w_out*Cout)."""
    _, _, kh, kw = w.shape
    gs = []
    for i in range(kh):
        g_i = None
        for j in range(kw):
            m = jnp.asarray(_shift_matrix(w_out, w_in, j - pad).T)     # (Win, Wout)
            t = jnp.kron(m, w[:, :, i, j].T)                           # (Win*Cin, Wout*Cout)
            g_i = t if g_i is None else g_i + t
        gs.append(g_i)
    return jnp.stack(gs, axis=0)


CONST_KEYS = ("hs1", "hs2", "hs3", "g", "bias", "ph1", "ph2", "pw",
              "f1", "fb1", "f2", "fb2")


def prepare_kernel_constants(p):
    """Pack all weights into MXU-friendly matmul operands (done once)."""
    c = {}
    # H-shift (row) selectors for the three convs.
    c["hs1"] = jnp.asarray(np.stack([_row_shift(B, H0, H0, i - 1) for i in range(3)]))  # (3,32,32)
    c["hs2"] = jnp.asarray(np.stack([_row_shift(B, H1, H1, i - 1) for i in range(3)]))  # (3,16,16)
    c["hs3"] = jnp.asarray(np.stack([_row_shift(B, 1, H2, i) for i in range(4)]))       # (4,2,8)
    # Lane (W-shift + channel-mix) weights, pre-summed over kw, all stacked.
    g1 = _conv_lane_weights_summed(p["conv1_w"], W0, W0, 1)            # (3, 64, 128)
    g2 = _conv_lane_weights_summed(p["conv2_w"], W1, W1, 1)            # (3, 64, 128)
    g3 = _conv_lane_weights_summed(p["conv3_w"], W2, W2, 0)            # (4, 64, 128)
    c["g"] = jnp.concatenate([g1, g2, g3], axis=0)                     # (10, 64, 128)
    # Conv biases, broadcast over the (w, c) lane layout, stacked.
    c["bias"] = jnp.stack([jnp.tile(p["conv1_b"], W0),
                           jnp.tile(p["conv2_b"], W1),
                           jnp.tile(p["conv3_b"], W2)], axis=0)        # (3, 128)
    # Max-pool row / lane selectors.
    c["ph1"] = jnp.asarray(np.stack([_row_pool(B, H0, d) for d in (0, 1)]))   # (2,16,32)
    c["ph2"] = jnp.asarray(np.stack([_row_pool(B, H1, d) for d in (0, 1)]))   # (2,8,16)
    pw1 = np.stack([_col_pool(W0, C1, d) for d in (0, 1)])                    # (2,128,64)
    pw2 = np.stack([_col_pool(W1, C2, d) for d in (0, 1)])                    # (2,128,64)
    c["pw"] = jnp.asarray(np.concatenate([pw1, pw2], axis=0))                 # (4,128,64)
    # Head: per-sequence-position Linear layers, block-diagonal over seq.
    eye_s = jnp.eye(SEQ, dtype=jnp.float32)
    c["f1"] = jnp.kron(eye_s, p["fc1_w"])                              # (128, 256)
    c["fb1"] = jnp.tile(p["fc1_b"], SEQ)[None, :]                      # (1, 256)
    pad = OUT_LANES - SEQ * NUM_CLASSES
    c["f2"] = jnp.pad(jnp.kron(eye_s, p["fc2_w"]), ((0, 0), (0, pad)))        # (256, 128)
    c["fb2"] = jnp.pad(jnp.tile(p["fc2_b"], SEQ)[None, :], ((0, 0), (0, pad)))  # (1, 128)
    return c


# --------------------------------------------------------------------------
# The fused kernel: nothing but 2-D MXU matmuls + adds + max in VMEM/vregs.
# --------------------------------------------------------------------------
def _crnn_kernel(x_ref, hs1, hs2, hs3, g, bias, ph1, ph2, pw,
                 f1, fb1, f2, fb2, out_ref):
    dot = functools.partial(jnp.dot, preferred_element_type=jnp.float32)

    x = x_ref[...]                                        # (B*16, 16*4) = (32, 64)
    b_all = bias[...]                                     # (3, 128)

    # conv1 3x3 pad1 (4 -> 8) + ReLU: 3 H-shift + 3 pre-summed lane matmuls
    acc = dot(dot(hs1[0], x), g[0])
    for i in range(1, 3):
        acc = acc + dot(dot(hs1[i], x), g[i])
    r1 = jnp.maximum(acc + b_all[0:1, :], 0.0)            # (B*16, 16*8) = (32, 128)

    # maxpool 2x2 (selection matmuls + elementwise max)
    ue, uo = dot(ph1[0], r1), dot(ph1[1], r1)
    p1 = jnp.maximum(jnp.maximum(dot(ue, pw[0]), dot(ue, pw[1])),
                     jnp.maximum(dot(uo, pw[0]), dot(uo, pw[1])))      # (16, 64)

    # conv2 3x3 pad1 (8 -> 16) + ReLU
    acc = dot(dot(hs2[0], p1), g[3])
    for i in range(1, 3):
        acc = acc + dot(dot(hs2[i], p1), g[3 + i])
    r2 = jnp.maximum(acc + b_all[1:2, :], 0.0)            # (B*8, 8*16) = (16, 128)

    # maxpool 2x2
    ue, uo = dot(ph2[0], r2), dot(ph2[1], r2)
    p2 = jnp.maximum(jnp.maximum(dot(ue, pw[2]), dot(ue, pw[3])),
                     jnp.maximum(dot(uo, pw[2]), dot(uo, pw[3])))      # (8, 64)

    # conv3 (4x1) pad0 (16 -> 32) + ReLU  -> latent rows = batch
    acc = dot(dot(hs3[0], p2), g[6])
    for i in range(1, 4):
        acc = acc + dot(dot(hs3[i], p2), g[6 + i])
    lat = jnp.maximum(acc + b_all[2:3, :], 0.0)           # (B, 4*32) = (2, 128)

    # head: fc1 + ReLU, fc2 (block-diagonal over the 4 sequence positions)
    h = jnp.maximum(dot(lat, f1[...]) + fb1[...], 0.0)    # (B, 256)
    out_ref[...] = (dot(h, f2[...]) + fb2[...]).astype(out_ref.dtype)  # (B, 128)


def _zero_map(ndim):
    return lambda i, _n=ndim: (0,) * _n


@jax.jit
def crnn_forward(x, consts):
    """x: NCHW (B, 4, 16, 16) -> (seq, B, num_classes) = (4, 2, 10)."""
    b, c_in, h, w = x.shape
    # Single boundary layout op: NCHW -> (B*H, W*C) lane-dense rows.
    xr = jnp.transpose(x, (0, 2, 3, 1)).reshape(b * h, w * c_in).astype(jnp.float32)

    args = (xr,) + tuple(consts[k] for k in CONST_KEYS)
    out2d = pl.pallas_call(
        _crnn_kernel,
        out_shape=jax.ShapeDtypeStruct((b, OUT_LANES), jnp.float32),
        grid=(1,),
        in_specs=[pl.BlockSpec(a.shape, _zero_map(a.ndim)) for a in args],
        out_specs=pl.BlockSpec((b, OUT_LANES), _zero_map(2)),
        compiler_params=pltpu.CompilerParams(dimension_semantics=("arbitrary",)),
    )(*args)

    # Matches latent.reshape(B, C, H*W).permute(2, 0, 1) followed by the head.
    logits = out2d[:, : SEQ * NUM_CLASSES]
    return logits.reshape(b, SEQ, NUM_CLASSES).transpose(1, 0, 2)


# --------------------------------------------------------------------------
# Pure-XLA reference (PyTorch semantics) used only for a correctness check.
# --------------------------------------------------------------------------
def _reference_forward(x, p):
    hi = jax.lax.Precision.HIGHEST

    def conv(h, w, b, pad):
        y = jax.lax.conv_general_dilated(
            h, w, window_strides=(1, 1), padding=[(pad, pad), (pad, pad)],
            dimension_numbers=("NCHW", "OIHW", "NCHW"), precision=hi)
        return y + b[None, :, None, None]

    def pool(h):
        return jax.lax.reduce_window(h, -jnp.inf, jax.lax.max,
                                     (1, 1, 2, 2), (1, 1, 2, 2), "VALID")

    h = jax.nn.relu(conv(x, p["conv1_w"], p["conv1_b"], 1))
    h = pool(h)
    h = jax.nn.relu(conv(h, p["conv2_w"], p["conv2_b"], 1))
    h = pool(h)
    h = jax.nn.relu(conv(h, p["conv3_w"], p["conv3_b"], 0))
    bb, cc, hh, ww = h.shape
    assert hh == 1
    lat = h.reshape(bb, cc, hh * ww).transpose(2, 0, 1)               # (seq, B, C)
    z = jax.nn.relu(jnp.einsum("sbc,cf->sbf", lat, p["fc1_w"], precision=hi)
                    + p["fc1_b"])
    return jnp.einsum("sbf,fk->sbk", z, p["fc2_w"], precision=hi) + p["fc2_b"]


if __name__ == "__main__":
    key = jax.random.PRNGKey(0)
    kx, kp = jax.random.split(key)
    x = jax.random.normal(kx, (B, C_IN, H0, W0), jnp.float32)   # NCHW like PyTorch
    params = init_params(kp)

    consts = prepare_kernel_constants(params)   # one-time weight packing
    out = jax.block_until_ready(crnn_forward(x, consts))
    assert out.shape == (SEQ, B, NUM_CLASSES), out.shape

    ref = _reference_forward(x, params)
    err = float(jnp.max(jnp.abs(out - ref)))
    assert err < 3e-2, f"mismatch vs reference: {err}"
    print("KERNEL_OK")
</pallas_src>

<mosaic_0001>
module attributes {stable_mosaic.version = 11 : i64} {
  func.func @_crnn_kernel(%arg0: i32, %arg1: memref<32x64xf32, #tpu.memory_space<vmem>>, %arg2: memref<3x32x32xf32, #tpu.memory_space<vmem>>, %arg3: memref<3x16x16xf32, #tpu.memory_space<vmem>>, %arg4: memref<4x2x8xf32, #tpu.memory_space<vmem>>, %arg5: memref<10x64x128xf32, #tpu.memory_space<vmem>>, %arg6: memref<3x128xf32, #tpu.memory_space<vmem>>, %arg7: memref<2x16x32xf32, #tpu.memory_space<vmem>>, %arg8: memref<2x8x16xf32, #tpu.memory_space<vmem>>, %arg9: memref<4x128x64xf32, #tpu.memory_space<vmem>>, %arg10: memref<128x256xf32, #tpu.memory_space<vmem>>, %arg11: memref<1x256xf32, #tpu.memory_space<vmem>>, %arg12: memref<256x128xf32, #tpu.memory_space<vmem>>, %arg13: memref<1x128xf32, #tpu.memory_space<vmem>>, %arg14: memref<2x128xf32, #tpu.memory_space<vmem>>) attributes {dimension_semantics = [#tpu.dimension_semantics<arbitrary>], iteration_bounds = array<i64: 1>, scalar_prefetch = 0 : i64, scratch_operands = 0 : i64, tpu.core_type = #tpu.core_type<tc>, window_params = [{pipeline_mode = #tpu.pipeline_mode<synchronous>, transform_indices = @transform_0, window_bounds = array<i64: 32, 64>}, {pipeline_mode = #tpu.pipeline_mode<synchronous>, transform_indices = @transform_1, window_bounds = array<i64: 3, 32, 32>}, {pipeline_mode = #tpu.pipeline_mode<synchronous>, transform_indices = @transform_2, window_bounds = array<i64: 3, 16, 16>}, {pipeline_mode = #tpu.pipeline_mode<synchronous>, transform_indices = @transform_3, window_bounds = array<i64: 4, 2, 8>}, {pipeline_mode = #tpu.pipeline_mode<synchronous>, transform_indices = @transform_4, window_bounds = array<i64: 10, 64, 128>}, {pipeline_mode = #tpu.pipeline_mode<synchronous>, transform_indices = @transform_5, window_bounds = array<i64: 3, 128>}, {pipeline_mode = #tpu.pipeline_mode<synchronous>, transform_indices = @transform_6, window_bounds = array<i64: 2, 16, 32>}, {pipeline_mode = #tpu.pipeline_mode<synchronous>, transform_indices = @transform_7, window_bounds = array<i64: 2, 8, 16>}, {pipeline_mode = #tpu.pipeline_mode<synchronous>, transform_indices = @transform_8, window_bounds = array<i64: 4, 128, 64>}, {pipeline_mode = #tpu.pipeline_mode<synchronous>, transform_indices = @transform_9, window_bounds = array<i64: 128, 256>}, {pipeline_mode = #tpu.pipeline_mode<synchronous>, transform_indices = @transform_10, window_bounds = array<i64: 1, 256>}, {pipeline_mode = #tpu.pipeline_mode<synchronous>, transform_indices = @transform_11, window_bounds = array<i64: 256, 128>}, {pipeline_mode = #tpu.pipeline_mode<synchronous>, transform_indices = @transform_12, window_bounds = array<i64: 1, 128>}, {pipeline_mode = #tpu.pipeline_mode<synchronous>, transform_indices = @transform_13, window_bounds = array<i64: 2, 128>}]} {
    %c0 = arith.constant 0 : index
    %c0_0 = arith.constant 0 : index
    %0 = vector.load %arg1[%c0, %c0_0] : memref<32x64xf32, #tpu.memory_space<vmem>>, vector<32x64xf32>
    %c0_1 = arith.constant 0 : index
    %c0_2 = arith.constant 0 : index
    %1 = vector.load %arg6[%c0_1, %c0_2] : memref<3x128xf32, #tpu.memory_space<vmem>>, vector<3x128xf32>
    %c0_3 = arith.constant 0 : index
    %c0_4 = arith.constant 0 : index
    %c0_5 = arith.constant 0 : index
    %2 = vector.load %arg2[%c0_3, %c0_4, %c0_5] : memref<3x32x32xf32, #tpu.memory_space<vmem>>, vector<1x32x32xf32>
    %3 = vector.shape_cast %2 : vector<1x32x32xf32> to vector<32x32xf32>
    %cst = arith.constant dense<0.000000e+00> : vector<32x64xf32>
    %4 = tpu.matmul %3, %0, %cst {dimension_numbers = #tpu.dot_dimension_numbers<[1], [0], [0], [1], [0, 0, 1, 1], [], []>} : vector<32x32xf32>, vector<32x64xf32>, vector<32x64xf32> -> vector<32x64xf32>
    %c0_6 = arith.constant 0 : index
    %c0_7 = arith.constant 0 : index
    %c0_8 = arith.constant 0 : index
    %5 = vector.load %arg5[%c0_6, %c0_7, %c0_8] : memref<10x64x128xf32, #tpu.memory_space<vmem>>, vector<1x64x128xf32>
    %6 = vector.shape_cast %5 : vector<1x64x128xf32> to vector<64x128xf32>
    %cst_9 = arith.constant dense<0.000000e+00> : vector<32x128xf32>
    %7 = tpu.matmul %4, %6, %cst_9 {dimension_numbers = #tpu.dot_dimension_numbers<[1], [0], [0], [1], [0, 0, 1, 1], [], []>} : vector<32x64xf32>, vector<64x128xf32>, vector<32x128xf32> -> vector<32x128xf32>
    %c1 = arith.constant 1 : index
    %c0_10 = arith.constant 0 : index
    %c0_11 = arith.constant 0 : index
    %8 = vector.load %arg2[%c1, %c0_10, %c0_11] : memref<3x32x32xf32, #tpu.memory_space<vmem>>, vector<1x32x32xf32>
    %9 = vector.shape_cast %8 : vector<1x32x32xf32> to vector<32x32xf32>
    %cst_12 = arith.constant dense<0.000000e+00> : vector<32x64xf32>
    %10 = tpu.matmul %9, %0, %cst_12 {dimension_numbers = #tpu.dot_dimension_numbers<[1], [0], [0], [1], [0, 0, 1, 1], [], []>} : vector<32x32xf32>, vector<32x64xf32>, vector<32x64xf32> -> vector<32x64xf32>
    %c1_13 = arith.constant 1 : index
    %c0_14 = arith.constant 0 : index
    %c0_15 = arith.constant 0 : index
    %11 = vector.load %arg5[%c1_13, %c0_14, %c0_15] : memref<10x64x128xf32, #tpu.memory_space<vmem>>, vector<1x64x128xf32>
    %12 = vector.shape_cast %11 : vector<1x64x128xf32> to vector<64x128xf32>
    %cst_16 = arith.constant dense<0.000000e+00> : vector<32x128xf32>
    %13 = tpu.matmul %10, %12, %cst_16 {dimension_numbers = #tpu.dot_dimension_numbers<[1], [0], [0], [1], [0, 0, 1, 1], [], []>} : vector<32x64xf32>, vector<64x128xf32>, vector<32x128xf32> -> vector<32x128xf32>
    %14 = arith.addf %7, %13 : vector<32x128xf32>
    %c2 = arith.constant 2 : index
    %c0_17 = arith.constant 0 : index
    %c0_18 = arith.constant 0 : index
    %15 = vector.load %arg2[%c2, %c0_17, %c0_18] : memref<3x32x32xf32, #tpu.memory_space<vmem>>, vector<1x32x32xf32>
    %16 = vector.shape_cast %15 : vector<1x32x32xf32> to vector<32x32xf32>
    %cst_19 = arith.constant dense<0.000000e+00> : vector<32x64xf32>
    %17 = tpu.matmul %16, %0, %cst_19 {dimension_numbers = #tpu.dot_dimension_numbers<[1], [0], [0], [1], [0, 0, 1, 1], [], []>} : vector<32x32xf32>, vector<32x64xf32>, vector<32x64xf32> -> vector<32x64xf32>
    %c2_20 = arith.constant 2 : index
    %c0_21 = arith.constant 0 : index
    %c0_22 = arith.constant 0 : index
    %18 = vector.load %arg5[%c2_20, %c0_21, %c0_22] : memref<10x64x128xf32, #tpu.memory_space<vmem>>, vector<1x64x128xf32>
    %19 = vector.shape_cast %18 : vector<1x64x128xf32> to vector<64x128xf32>
    %cst_23 = arith.constant dense<0.000000e+00> : vector<32x128xf32>
    %20 = tpu.matmul %17, %19, %cst_23 {dimension_numbers = #tpu.dot_dimension_numbers<[1], [0], [0], [1], [0, 0, 1, 1], [], []>} : vector<32x64xf32>, vector<64x128xf32>, vector<32x128xf32> -> vector<32x128xf32>
    %21 = arith.addf %14, %20 : vector<32x128xf32>
    %22 = vector.extract_strided_slice %1 {offsets = [0, 0], sizes = [1, 128], strides = [1, 1]} : vector<3x128xf32> to vector<1x128xf32>
    %23 = vector.broadcast %22 : vector<1x128xf32> to vector<32x128xf32>
    %24 = arith.addf %21, %23 : vector<32x128xf32>
    %cst_24 = arith.constant 0.000000e+00 : f32
    %25 = vector.broadcast %cst_24 : f32 to vector<32x128xf32>
    %26 = arith.maximumf %24, %25 : vector<32x128xf32>
    %c0_25 = arith.constant 0 : index
    %c0_26 = arith.constant 0 : index
    %c0_27 = arith.constant 0 : index
    %27 = vector.load %arg7[%c0_25, %c0_26, %c0_27] : memref<2x16x32xf32, #tpu.memory_space<vmem>>, vector<1x16x32xf32>
    %28 = vector.shape_cast %27 : vector<1x16x32xf32> to vector<16x32xf32>
    %cst_28 = arith.constant dense<0.000000e+00> : vector<16x128xf32>
    %29 = tpu.matmul %28, %26, %cst_28 {dimension_numbers = #tpu.dot_dimension_numbers<[1], [0], [0], [1], [0, 0, 1, 1], [], []>} : vector<16x32xf32>, vector<32x128xf32>, vector<16x128xf32> -> vector<16x128xf32>
    %c1_29 = arith.constant 1 : index
    %c0_30 = arith.constant 0 : index
    %c0_31 = arith.constant 0 : index
    %30 = vector.load %arg7[%c1_29, %c0_30, %c0_31] : memref<2x16x32xf32, #tpu.memory_space<vmem>>, vector<1x16x32xf32>
    %31 = vector.shape_cast %30 : vector<1x16x32xf32> to vector<16x32xf32>
    %cst_32 = arith.constant dense<0.000000e+00> : vector<16x128xf32>
    %32 = tpu.matmul %31, %26, %cst_32 {dimension_numbers = #tpu.dot_dimension_numbers<[1], [0], [0], [1], [0, 0, 1, 1], [], []>} : vector<16x32xf32>, vector<32x128xf32>, vector<16x128xf32> -> vector<16x128xf32>
    %c0_33 = arith.constant 0 : index
    %c0_34 = arith.constant 0 : index
    %c0_35 = arith.constant 0 : index
    %33 = vector.load %arg9[%c0_33, %c0_34, %c0_35] : memref<4x128x64xf32, #tpu.memory_space<vmem>>, vector<1x128x64xf32>
    %34 = vector.shape_cast %33 : vector<1x128x64xf32> to vector<128x64xf32>
    %cst_36 = arith.constant dense<0.000000e+00> : vector<16x64xf32>
    %35 = tpu.matmul %29, %34, %cst_36 {dimension_numbers = #tpu.dot_dimension_numbers<[1], [0], [0], [1], [0, 0, 1, 1], [], []>} : vector<16x128xf32>, vector<128x64xf32>, vector<16x64xf32> -> vector<16x64xf32>
    %c1_37 = arith.constant 1 : index
    %c0_38 = arith.constant 0 : index
    %c0_39 = arith.constant 0 : index
    %36 = vector.load %arg9[%c1_37, %c0_38, %c0_39] : memref<4x128x64xf32, #tpu.memory_space<vmem>>, vector<1x128x64xf32>
    %37 = vector.shape_cast %36 : vector<1x128x64xf32> to vector<128x64xf32>
    %cst_40 = arith.constant dense<0.000000e+00> : vector<16x64xf32>
    %38 = tpu.matmul %29, %37, %cst_40 {dimension_numbers = #tpu.dot_dimension_numbers<[1], [0], [0], [1], [0, 0, 1, 1], [], []>} : vector<16x128xf32>, vector<128x64xf32>, vector<16x64xf32> -> vector<16x64xf32>
    %39 = arith.maximumf %35, %38 : vector<16x64xf32>
    %c0_41 = arith.constant 0 : index
    %c0_42 = arith.constant 0 : index
    %c0_43 = arith.constant 0 : index
    %40 = vector.load %arg9[%c0_41, %c0_42, %c0_43] : memref<4x128x64xf32, #tpu.memory_space<vmem>>, vector<1x128x64xf32>
    %41 = vector.shape_cast %40 : vector<1x128x64xf32> to vector<128x64xf32>
    %cst_44 = arith.constant dense<0.000000e+00> : vector<16x64xf32>
    %42 = tpu.matmul %32, %41, %cst_44 {dimension_numbers = #tpu.dot_dimension_numbers<[1], [0], [0], [1], [0, 0, 1, 1], [], []>} : vector<16x128xf32>, vector<128x64xf32>, vector<16x64xf32> -> vector<16x64xf32>
    %c1_45 = arith.constant 1 : index
    %c0_46 = arith.constant 0 : index
    %c0_47 = arith.constant 0 : index
    %43 = vector.load %arg9[%c1_45, %c0_46, %c0_47] : memref<4x128x64xf32, #tpu.memory_space<vmem>>, vector<1x128x64xf32>
    %44 = vector.shape_cast %43 : vector<1x128x64xf32> to vector<128x64xf32>
    %cst_48 = arith.constant dense<0.000000e+00> : vector<16x64xf32>
    %45 = tpu.matmul %32, %44, %cst_48 {dimension_numbers = #tpu.dot_dimension_numbers<[1], [0], [0], [1], [0, 0, 1, 1], [], []>} : vector<16x128xf32>, vector<128x64xf32>, vector<16x64xf32> -> vector<16x64xf32>
    %46 = arith.maximumf %42, %45 : vector<16x64xf32>
    %47 = arith.maximumf %39, %46 : vector<16x64xf32>
    %c0_49 = arith.constant 0 : index
    %c0_50 = arith.constant 0 : index
    %c0_51 = arith.constant 0 : index
    %48 = vector.load %arg3[%c0_49, %c0_50, %c0_51] : memref<3x16x16xf32, #tpu.memory_space<vmem>>, vector<1x16x16xf32>
    %49 = vector.shape_cast %48 : vector<1x16x16xf32> to vector<16x16xf32>
    %cst_52 = arith.constant dense<0.000000e+00> : vector<16x64xf32>
    %50 = tpu.matmul %49, %47, %cst_52 {dimension_numbers = #tpu.dot_dimension_numbers<[1], [0], [0], [1], [0, 0, 1, 1], [], []>} : vector<16x16xf32>, vector<16x64xf32>, vector<16x64xf32> -> vector<16x64xf32>
    %c3 = arith.constant 3 : index
    %c0_53 = arith.constant 0 : index
    %c0_54 = arith.constant 0 : index
    %51 = vector.load %arg5[%c3, %c0_53, %c0_54] : memref<10x64x128xf32, #tpu.memory_space<vmem>>, vector<1x64x128xf32>
    %52 = vector.shape_cast %51 : vector<1x64x128xf32> to vector<64x128xf32>
    %cst_55 = arith.constant dense<0.000000e+00> : vector<16x128xf32>
    %53 = tpu.matmul %50, %52, %cst_55 {dimension_numbers = #tpu.dot_dimension_numbers<[1], [0], [0], [1], [0, 0, 1, 1], [], []>} : vector<16x64xf32>, vector<64x128xf32>, vector<16x128xf32> -> vector<16x128xf32>
    %c1_56 = arith.constant 1 : index
    %c0_57 = arith.constant 0 : index
    %c0_58 = arith.constant 0 : index
    %54 = vector.load %arg3[%c1_56, %c0_57, %c0_58] : memref<3x16x16xf32, #tpu.memory_space<vmem>>, vector<1x16x16xf32>
    %55 = vector.shape_cast %54 : vector<1x16x16xf32> to vector<16x16xf32>
    %cst_59 = arith.constant dense<0.000000e+00> : vector<16x64xf32>
    %56 = tpu.matmul %55, %47, %cst_59 {dimension_numbers = #tpu.dot_dimension_numbers<[1], [0], [0], [1], [0, 0, 1, 1], [], []>} : vector<16x16xf32>, vector<16x64xf32>, vector<16x64xf32> -> vector<16x64xf32>
    %c4 = arith.constant 4 : index
    %c0_60 = arith.constant 0 : index
    %c0_61 = arith.constant 0 : index
    %57 = vector.load %arg5[%c4, %c0_60, %c0_61] : memref<10x64x128xf32, #tpu.memory_space<vmem>>, vector<1x64x128xf32>
    %58 = vector.shape_cast %57 : vector<1x64x128xf32> to vector<64x128xf32>
    %cst_62 = arith.constant dense<0.000000e+00> : vector<16x128xf32>
    %59 = tpu.matmul %56, %58, %cst_62 {dimension_numbers = #tpu.dot_dimension_numbers<[1], [0], [0], [1], [0, 0, 1, 1], [], []>} : vector<16x64xf32>, vector<64x128xf32>, vector<16x128xf32> -> vector<16x128xf32>
    %60 = arith.addf %53, %59 : vector<16x128xf32>
    %c2_63 = arith.constant 2 : index
    %c0_64 = arith.constant 0 : index
    %c0_65 = arith.constant 0 : index
    %61 = vector.load %arg3[%c2_63, %c0_64, %c0_65] : memref<3x16x16xf32, #tpu.memory_space<vmem>>, vector<1x16x16xf32>
    %62 = vector.shape_cast %61 : vector<1x16x16xf32> to vector<16x16xf32>
    %cst_66 = arith.constant dense<0.000000e+00> : vector<16x64xf32>
    %63 = tpu.matmul %62, %47, %cst_66 {dimension_numbers = #tpu.dot_dimension_numbers<[1], [0], [0], [1], [0, 0, 1, 1], [], []>} : vector<16x16xf32>, vector<16x64xf32>, vector<16x64xf32> -> vector<16x64xf32>
    %c5 = arith.constant 5 : index
    %c0_67 = arith.constant 0 : index
    %c0_68 = arith.constant 0 : index
    %64 = vector.load %arg5[%c5, %c0_67, %c0_68] : memref<10x64x128xf32, #tpu.memory_space<vmem>>, vector<1x64x128xf32>
    %65 = vector.shape_cast %64 : vector<1x64x128xf32> to vector<64x128xf32>
    %cst_69 = arith.constant dense<0.000000e+00> : vector<16x128xf32>
    %66 = tpu.matmul %63, %65, %cst_69 {dimension_numbers = #tpu.dot_dimension_numbers<[1], [0], [0], [1], [0, 0, 1, 1], [], []>} : vector<16x64xf32>, vector<64x128xf32>, vector<16x128xf32> -> vector<16x128xf32>
    %67 = arith.addf %60, %66 : vector<16x128xf32>
    %68 = vector.extract_strided_slice %1 {offsets = [1, 0], sizes = [1, 128], strides = [1, 1]} : vector<3x128xf32> to vector<1x128xf32>
    %69 = vector.broadcast %68 : vector<1x128xf32> to vector<16x128xf32>
    %70 = arith.addf %67, %69 : vector<16x128xf32>
    %cst_70 = arith.constant 0.000000e+00 : f32
    %71 = vector.broadcast %cst_70 : f32 to vector<16x128xf32>
    %72 = arith.maximumf %70, %71 : vector<16x128xf32>
    %c0_71 = arith.constant 0 : index
    %c0_72 = arith.constant 0 : index
    %c0_73 = arith.constant 0 : index
    %73 = vector.load %arg8[%c0_71, %c0_72, %c0_73] : memref<2x8x16xf32, #tpu.memory_space<vmem>>, vector<1x8x16xf32>
    %74 = vector.shape_cast %73 : vector<1x8x16xf32> to vector<8x16xf32>
    %cst_74 = arith.constant dense<0.000000e+00> : vector<8x128xf32>
    %75 = tpu.matmul %74, %72, %cst_74 {dimension_numbers = #tpu.dot_dimension_numbers<[1], [0], [0], [1], [0, 0, 1, 1], [], []>} : vector<8x16xf32>, vector<16x128xf32>, vector<8x128xf32> -> vector<8x128xf32>
    %c1_75 = arith.constant 1 : index
    %c0_76 = arith.constant 0 : index
    %c0_77 = arith.constant 0 : index
    %76 = vector.load %arg8[%c1_75, %c0_76, %c0_77] : memref<2x8x16xf32, #tpu.memory_space<vmem>>, vector<1x8x16xf32>
    %77 = vector.shape_cast %76 : vector<1x8x16xf32> to vector<8x16xf32>
    %cst_78 = arith.constant dense<0.000000e+00> : vector<8x128xf32>
    %78 = tpu.matmul %77, %72, %cst_78 {dimension_numbers = #tpu.dot_dimension_numbers<[1], [0], [0], [1], [0, 0, 1, 1], [], []>} : vector<8x16xf32>, vector<16x128xf32>, vector<8x128xf32> -> vector<8x128xf32>
    %c2_79 = arith.constant 2 : index
    %c0_80 = arith.constant 0 : index
    %c0_81 = arith.constant 0 : index
    %79 = vector.load %arg9[%c2_79, %c0_80, %c0_81] : memref<4x128x64xf32, #tpu.memory_space<vmem>>, vector<1x128x64xf32>
    %80 = vector.shape_cast %79 : vector<1x128x64xf32> to vector<128x64xf32>
    %cst_82 = arith.constant dense<0.000000e+00> : vector<8x64xf32>
    %81 = tpu.matmul %75, %80, %cst_82 {dimension_numbers = #tpu.dot_dimension_numbers<[1], [0], [0], [1], [0, 0, 1, 1], [], []>} : vector<8x128xf32>, vector<128x64xf32>, vector<8x64xf32> -> vector<8x64xf32>
    %c3_83 = arith.constant 3 : index
    %c0_84 = arith.constant 0 : index
    %c0_85 = arith.constant 0 : index
    %82 = vector.load %arg9[%c3_83, %c0_84, %c0_85] : memref<4x128x64xf32, #tpu.memory_space<vmem>>, vector<1x128x64xf32>
    %83 = vector.shape_cast %82 : vector<1x128x64xf32> to vector<128x64xf32>
    %cst_86 = arith.constant dense<0.000000e+00> : vector<8x64xf32>
    %84 = tpu.matmul %75, %83, %cst_86 {dimension_numbers = #tpu.dot_dimension_numbers<[1], [0], [0], [1], [0, 0, 1, 1], [], []>} : vector<8x128xf32>, vector<128x64xf32>, vector<8x64xf32> -> vector<8x64xf32>
    %85 = arith.maximumf %81, %84 : vector<8x64xf32>
    %c2_87 = arith.constant 2 : index
    %c0_88 = arith.constant 0 : index
    %c0_89 = arith.constant 0 : index
    %86 = vector.load %arg9[%c2_87, %c0_88, %c0_89] : memref<4x128x64xf32, #tpu.memory_space<vmem>>, vector<1x128x64xf32>
    %87 = vector.shape_cast %86 : vector<1x128x64xf32> to vector<128x64xf32>
    %cst_90 = arith.constant dense<0.000000e+00> : vector<8x64xf32>
    %88 = tpu.matmul %78, %87, %cst_90 {dimension_numbers = #tpu.dot_dimension_numbers<[1], [0], [0], [1], [0, 0, 1, 1], [], []>} : vector<8x128xf32>, vector<128x64xf32>, vector<8x64xf32> -> vector<8x64xf32>
    %c3_91 = arith.constant 3 : index
    %c0_92 = arith.constant 0 : index
    %c0_93 = arith.constant 0 : index
    %89 = vector.load %arg9[%c3_91, %c0_92, %c0_93] : memref<4x128x64xf32, #tpu.memory_space<vmem>>, vector<1x128x64xf32>
    %90 = vector.shape_cast %89 : vector<1x128x64xf32> to vector<128x64xf32>
    %cst_94 = arith.constant dense<0.000000e+00> : vector<8x64xf32>
    %91 = tpu.matmul %78, %90, %cst_94 {dimension_numbers = #tpu.dot_dimension_numbers<[1], [0], [0], [1], [0, 0, 1, 1], [], []>} : vector<8x128xf32>, vector<128x64xf32>, vector<8x64xf32> -> vector<8x64xf32>
    %92 = arith.maximumf %88, %91 : vector<8x64xf32>
    %93 = arith.maximumf %85, %92 : vector<8x64xf32>
    %c0_95 = arith.constant 0 : index
    %c0_96 = arith.constant 0 : index
    %c0_97 = arith.constant 0 : index
    %94 = vector.load %arg4[%c0_95, %c0_96, %c0_97] : memref<4x2x8xf32, #tpu.memory_space<vmem>>, vector<1x2x8xf32>
    %95 = vector.shape_cast %94 : vector<1x2x8xf32> to vector<2x8xf32>
    %cst_98 = arith.constant dense<0.000000e+00> : vector<2x64xf32>
    %96 = tpu.matmul %95, %93, %cst_98 {dimension_numbers = #tpu.dot_dimension_numbers<[1], [0], [0], [1], [0, 0, 1, 1], [], []>} : vector<2x8xf32>, vector<8x64xf32>, vector<2x64xf32> -> vector<2x64xf32>
    %c6 = arith.constant 6 : index
    %c0_99 = arith.constant 0 : index
    %c0_100 = arith.constant 0 : index
    %97 = vector.load %arg5[%c6, %c0_99, %c0_100] : memref<10x64x128xf32, #tpu.memory_space<vmem>>, vector<1x64x128xf32>
    %98 = vector.shape_cast %97 : vector<1x64x128xf32> to vector<64x128xf32>
    %cst_101 = arith.constant dense<0.000000e+00> : vector<2x128xf32>
    %99 = tpu.matmul %96, %98, %cst_101 {dimension_numbers = #tpu.dot_dimension_numbers<[1], [0], [0], [1], [0, 0, 1, 1], [], []>} : vector<2x64xf32>, vector<64x128xf32>, vector<2x128xf32> -> vector<2x128xf32>
    %c1_102 = arith.constant 1 : index
    %c0_103 = arith.constant 0 : index
    %c0_104 = arith.constant 0 : index
    %100 = vector.load %arg4[%c1_102, %c0_103, %c0_104] : memref<4x2x8xf32, #tpu.memory_space<vmem>>, vector<1x2x8xf32>
    %101 = vector.shape_cast %100 : vector<1x2x8xf32> to vector<2x8xf32>
    %cst_105 = arith.constant dense<0.000000e+00> : vector<2x64xf32>
    %102 = tpu.matmul %101, %93, %cst_105 {dimension_numbers = #tpu.dot_dimension_numbers<[1], [0], [0], [1], [0, 0, 1, 1], [], []>} : vector<2x8xf32>, vector<8x64xf32>, vector<2x64xf32> -> vector<2x64xf32>
    %c7 = arith.constant 7 : index
    %c0_106 = arith.constant 0 : index
    %c0_107 = arith.constant 0 : index
    %103 = vector.load %arg5[%c7, %c0_106, %c0_107] : memref<10x64x128xf32, #tpu.memory_space<vmem>>, vector<1x64x128xf32>
    %104 = vector.shape_cast %103 : vector<1x64x128xf32> to vector<64x128xf32>
    %cst_108 = arith.constant dense<0.000000e+00> : vector<2x128xf32>
    %105 = tpu.matmul %102, %104, %cst_108 {dimension_numbers = #tpu.dot_dimension_numbers<[1], [0], [0], [1], [0, 0, 1, 1], [], []>} : vector<2x64xf32>, vector<64x128xf32>, vector<2x128xf32> -> vector<2x128xf32>
    %106 = arith.addf %99, %105 : vector<2x128xf32>
    %c2_109 = arith.constant 2 : index
    %c0_110 = arith.constant 0 : index
    %c0_111 = arith.constant 0 : index
    %107 = vector.load %arg4[%c2_109, %c0_110, %c0_111] : memref<4x2x8xf32, #tpu.memory_space<vmem>>, vector<1x2x8xf32>
    %108 = vector.shape_cast %107 : vector<1x2x8xf32> to vector<2x8xf32>
    %cst_112 = arith.constant dense<0.000000e+00> : vector<2x64xf32>
    %109 = tpu.matmul %108, %93, %cst_112 {dimension_numbers = #tpu.dot_dimension_numbers<[1], [0], [0], [1], [0, 0, 1, 1], [], []>} : vector<2x8xf32>, vector<8x64xf32>, vector<2x64xf32> -> vector<2x64xf32>
    %c8 = arith.constant 8 : index
    %c0_113 = arith.constant 0 : index
    %c0_114 = arith.constant 0 : index
    %110 = vector.load %arg5[%c8, %c0_113, %c0_114] : memref<10x64x128xf32, #tpu.memory_space<vmem>>, vector<1x64x128xf32>
    %111 = vector.shape_cast %110 : vector<1x64x128xf32> to vector<64x128xf32>
    %cst_115 = arith.constant dense<0.000000e+00> : vector<2x128xf32>
    %112 = tpu.matmul %109, %111, %cst_115 {dimension_numbers = #tpu.dot_dimension_numbers<[1], [0], [0], [1], [0, 0, 1, 1], [], []>} : vector<2x64xf32>, vector<64x128xf32>, vector<2x128xf32> -> vector<2x128xf32>
    %113 = arith.addf %106, %112 : vector<2x128xf32>
    %c3_116 = arith.constant 3 : index
    %c0_117 = arith.constant 0 : index
    %c0_118 = arith.constant 0 : index
    %114 = vector.load %arg4[%c3_116, %c0_117, %c0_118] : memref<4x2x8xf32, #tpu.memory_space<vmem>>, vector<1x2x8xf32>
    %115 = vector.shape_cast %114 : vector<1x2x8xf32> to vector<2x8xf32>
    %cst_119 = arith.constant dense<0.000000e+00> : vector<2x64xf32>
    %116 = tpu.matmul %115, %93, %cst_119 {dimension_numbers = #tpu.dot_dimension_numbers<[1], [0], [0], [1], [0, 0, 1, 1], [], []>} : vector<2x8xf32>, vector<8x64xf32>, vector<2x64xf32> -> vector<2x64xf32>
    %c9 = arith.constant 9 : index
    %c0_120 = arith.constant 0 : index
    %c0_121 = arith.constant 0 : index
    %117 = vector.load %arg5[%c9, %c0_120, %c0_121] : memref<10x64x128xf32, #tpu.memory_space<vmem>>, vector<1x64x128xf32>
    %118 = vector.shape_cast %117 : vector<1x64x128xf32> to vector<64x128xf32>
    %cst_122 = arith.constant dense<0.000000e+00> : vector<2x128xf32>
    %119 = tpu.matmul %116, %118, %cst_122 {dimension_numbers = #tpu.dot_dimension_numbers<[1], [0], [0], [1], [0, 0, 1, 1], [], []>} : vector<2x64xf32>, vector<64x128xf32>, vector<2x128xf32> -> vector<2x128xf32>
    %120 = arith.addf %113, %119 : vector<2x128xf32>
    %121 = vector.extract_strided_slice %1 {offsets = [2, 0], sizes = [1, 128], strides = [1, 1]} : vector<3x128xf32> to vector<1x128xf32>
    %122 = vector.broadcast %121 : vector<1x128xf32> to vector<2x128xf32>
    %123 = arith.addf %120, %122 : vector<2x128xf32>
    %cst_123 = arith.constant 0.000000e+00 : f32
    %124 = vector.broadcast %cst_123 : f32 to vector<2x128xf32>
    %125 = arith.maximumf %123, %124 : vector<2x128xf32>
    %c0_124 = arith.constant 0 : index
    %c0_125 = arith.constant 0 : index
    %126 = vector.load %arg10[%c0_124, %c0_125] : memref<128x256xf32, #tpu.memory_space<vmem>>, vector<128x256xf32>
    %cst_126 = arith.constant dense<0.000000e+00> : vector<2x256xf32>
    %127 = tpu.matmul %125, %126, %cst_126 {dimension_numbers = #tpu.dot_dimension_numbers<[1], [0], [0], [1], [0, 0, 1, 1], [], []>} : vector<2x128xf32>, vector<128x256xf32>, vector<2x256xf32> -> vector<2x256xf32>
    %c0_127 = arith.constant 0 : index
    %c0_128 = arith.constant 0 : index
    %128 = vector.load %arg11[%c0_127, %c0_128] : memref<1x256xf32, #tpu.memory_space<vmem>>, vector<1x256xf32>
    %129 = vector.broadcast %128 : vector<1x256xf32> to vector<2x256xf32>
    %130 = arith.addf %127, %129 : vector<2x256xf32>
    %cst_129 = arith.constant 0.000000e+00 : f32
    %131 = vector.broadcast %cst_129 : f32 to vector<2x256xf32>
    %132 = arith.maximumf %130, %131 : vector<2x256xf32>
    %c0_130 = arith.constant 0 : index
    %c0_131 = arith.constant 0 : index
    %133 = vector.load %arg12[%c0_130, %c0_131] : memref<256x128xf32, #tpu.memory_space<vmem>>, vector<256x128xf32>
    %cst_132 = arith.constant dense<0.000000e+00> : vector<2x128xf32>
    %134 = tpu.matmul %132, %133, %cst_132 {dimension_numbers = #tpu.dot_dimension_numbers<[1], [0], [0], [1], [0, 0, 1, 1], [], []>} : vector<2x256xf32>, vector<256x128xf32>, vector<2x128xf32> -> vector<2x128xf32>
    %c0_133 = arith.constant 0 : index
    %c0_134 = arith.constant 0 : index
    %135 = vector.load %arg13[%c0_133, %c0_134] : memref<1x128xf32, #tpu.memory_space<vmem>>, vector<1x128xf32>
    %136 = vector.broadcast %135 : vector<1x128xf32> to vector<2x128xf32>
    %137 = arith.addf %134, %136 : vector<2x128xf32>
    %c0_135 = arith.constant 0 : index
    %c0_136 = arith.constant 0 : index
    %138 = vector.load %arg14[%c0_135, %c0_136] : memref<2x128xf32, #tpu.memory_space<vmem>>, vector<2x128xf32>
    tpu.vector_store %arg14[%c0_135, %c0_136], %137 {strides = array<i32>} : memref<2x128xf32, #tpu.memory_space<vmem>>, vector<2x128xf32>,
    return
  }
  func.func @transform_0(%arg0: i32) -> (i32, i32) {
    %c0_i32 = arith.constant 0 : i32
    %c0_i32_0 = arith.constant 0 : i32
    %c0_i32_1 = arith.constant 0 : i32
    return %c0_i32, %c0_i32_0 : i32, i32
  }
  func.func @transform_1(%arg0: i32) -> (i32, i32, i32) {
    %c0_i32 = arith.constant 0 : i32
    %c0_i32_0 = arith.constant 0 : i32
    %c0_i32_1 = arith.constant 0 : i32
    %c0_i32_2 = arith.constant 0 : i32
    return %c0_i32, %c0_i32_0, %c0_i32_1 : i32, i32, i32
  }
  func.func @transform_2(%arg0: i32) -> (i32, i32, i32) {
    %c0_i32 = arith.constant 0 : i32
    %c0_i32_0 = arith.constant 0 : i32
    %c0_i32_1 = arith.constant 0 : i32
    %c0_i32_2 = arith.constant 0 : i32
    return %c0_i32, %c0_i32_0, %c0_i32_1 : i32, i32, i32
  }
  func.func @transform_3(%arg0: i32) -> (i32, i32, i32) {
    %c0_i32 = arith.constant 0 : i32
    %c0_i32_0 = arith.constant 0 : i32
    %c0_i32_1 = arith.constant 0 : i32
    %c0_i32_2 = arith.constant 0 : i32
    return %c0_i32, %c0_i32_0, %c0_i32_1 : i32, i32, i32
  }
  func.func @transform_4(%arg0: i32) -> (i32, i32, i32) {
    %c0_i32 = arith.constant 0 : i32
    %c0_i32_0 = arith.constant 0 : i32
    %c0_i32_1 = arith.constant 0 : i32
    %c0_i32_2 = arith.constant 0 : i32
    return %c0_i32, %c0_i32_0, %c0_i32_1 : i32, i32, i32
  }
  func.func @transform_5(%arg0: i32) -> (i32, i32) {
    %c0_i32 = arith.constant 0 : i32
    %c0_i32_0 = arith.constant 0 : i32
    %c0_i32_1 = arith.constant 0 : i32
    return %c0_i32, %c0_i32_0 : i32, i32
  }
  func.func @transform_6(%arg0: i32) -> (i32, i32, i32) {
    %c0_i32 = arith.constant 0 : i32
    %c0_i32_0 = arith.constant 0 : i32
    %c0_i32_1 = arith.constant 0 : i32
    %c0_i32_2 = arith.constant 0 : i32
    return %c0_i32, %c0_i32_0, %c0_i32_1 : i32, i32, i32
  }
  func.func @transform_7(%arg0: i32) -> (i32, i32, i32) {
    %c0_i32 = arith.constant 0 : i32
    %c0_i32_0 = arith.constant 0 : i32
    %c0_i32_1 = arith.constant 0 : i32
    %c0_i32_2 = arith.constant 0 : i32
    return %c0_i32, %c0_i32_0, %c0_i32_1 : i32, i32, i32
  }
  func.func @transform_8(%arg0: i32) -> (i32, i32, i32) {
    %c0_i32 = arith.constant 0 : i32
    %c0_i32_0 = arith.constant 0 : i32
    %c0_i32_1 = arith.constant 0 : i32
    %c0_i32_2 = arith.constant 0 : i32
    return %c0_i32, %c0_i32_0, %c0_i32_1 : i32, i32, i32
  }
  func.func @transform_9(%arg0: i32) -> (i32, i32) {
    %c0_i32 = arith.constant 0 : i32
    %c0_i32_0 = arith.constant 0 : i32
    %c0_i32_1 = arith.constant 0 : i32
    return %c0_i32, %c0_i32_0 : i32, i32
  }
  func.func @transform_10(%arg0: i32) -> (i32, i32) {
    %c0_i32 = arith.constant 0 : i32
    %c0_i32_0 = arith.constant 0 : i32
    %c0_i32_1 = arith.constant 0 : i32
    return %c0_i32, %c0_i32_0 : i32, i32
  }
  func.func @transform_11(%arg0: i32) -> (i32, i32) {
    %c0_i32 = arith.constant 0 : i32
    %c0_i32_0 = arith.constant 0 : i32
    %c0_i32_1 = arith.constant 0 : i32
    return %c0_i32, %c0_i32_0 : i32, i32
  }
  func.func @transform_12(%arg0: i32) -> (i32, i32) {
    %c0_i32 = arith.constant 0 : i32
    %c0_i32_0 = arith.constant 0 : i32
    %c0_i32_1 = arith.constant 0 : i32
    return %c0_i32, %c0_i32_0 : i32, i32
  }
  func.func @transform_13(%arg0: i32) -> (i32, i32) {
    %c0_i32 = arith.constant 0 : i32
    %c0_i32_0 = arith.constant 0 : i32
    %c0_i32_1 = arith.constant 0 : i32
    return %c0_i32, %c0_i32_0 : i32, i32
  }
}

</mosaic_0001>

<bundles_post_ra>
// kernel: crnn_forward.1
= control target key start
LH: loop header
LB: loop body
LE: loop exit
PB: predicated region body
PF: predicated region fallthrough
CT: control target
= control target key end

     0   :  { %18 = vsyncpa [#allocation3], 0  ;;  %s5749_s0 = inlined_call_operand.vmem [shape: f32[32,64], index: 0, kind: input, shape index: {}]   ;;  %s5750_s1 = inlined_call_operand.vmem [shape: f32[3,32,32], index: 1, kind: input, shape index: {}]   ;;  %s5751_s2 = inlined_call_operand.vmem [shape: f32[3,16,16], index: 2, kind: input, shape index: {}]   ;;  %s5752_s3 = inlined_call_operand.vmem [shape: f32[4,2,8], index: 3, kind: input, shape index: {}]   ;;  %s5753_s4 = inlined_call_operand.vmem [shape: f32[10,64,128], index: 4, kind: input, shape index: {}]   ;;  %s5754_s5 = inlined_call_operand.vmem [shape: f32[3,128], index: 5, kind: input, shape index: {}]   ;;  %s5755_s6 = inlined_call_operand.vmem [shape: f32[2,16,32], index: 6, kind: input, shape index: {}]   ;;  %s5756_s7 = inlined_call_operand.vmem [shape: f32[2,8,16], index: 7, kind: input, shape index: {}]   ;;  %s5757_s8 = inlined_call_operand.vmem [shape: f32[4,128,64], index: 8, kind: input, shape index: {}]   ;;  %s5758_s9 = inlined_call_operand.vmem [shape: f32[128,256], index: 9, kind: input, shape index: {}]   ;;  %s5759_s10 = inlined_call_operand.hbm [shape: f32[1,256], index: 10, kind: input, shape index: {}]   ;;  %s5760_s11 = inlined_call_operand.hbm [shape: f32[256,128], index: 11, kind: input, shape index: {}]   ;;  %s5761_s12 = inlined_call_operand.vmem [shape: f32[1,128], index: 12, kind: input, shape index: {}]   ;;  %s5762_s13 = inlined_call_operand.vmem [shape: f32[2,128], index: 13, kind: output, shape index: {}]  }
   0x1   :  { %19 = vsyncpa [#allocation5], 0  ;;  %s4772_s25 = smov [#allocation2]   ;;  %s4773_s27 = smov [#allocation4]  }
   0x2   :  { %s46_s26 = sshll.u32 %s4772_s25, 4  ;;  %s55_s28 = sshll.u32 %s4773_s27, 4  ;;  %s47_s26 = int_to_ptr.vmem [resolvable:$true] %s46_s26  ;;  %s4849_s28 = int_to_ptr.vmem [resolvable:$true] %s55_s28 }
   0x3   :  { %s4724_s14 = scalar_lea.hbm %s5759_s10, 32 }
   0x4   :  { %p4725_p0 = scmp.ne.s32.totalorder %s5759_s10, %s4724_s14  ;;  %p4728_p1 = scmp.lt.u32.totalorder %s4724_s14, %s5759_s10 }
   0x6   :  { %p4730_p2 = pnand %p4728_p1, %p4725_p0 }
   0x8   :  { %4733 = shalt.err (!%p4730_p2)
}
   0x9   :  { %s4734_s19 = scalar_lea.vmem %s47_s26, 32  ;;  %p4739_p4 = scmp.lt.s32.totalorder %s47_s26, %s47_s26 }
   0xa   :  { %p4735_p3 = scmp.ne.s32.totalorder %s47_s26, %s4734_s19  ;;  %p4740_p5 = scmp.lt.s32.totalorder %s4734_s19, %s4734_s19 }
   0xc   :  { %p4741_p6 = por %p4740_p5, %p4739_p4 }
   0xe   :  { %p4742_p7 = pnand %p4741_p6, %p4735_p3 }
  0x10   :  { %4745 = shalt.err (!%p4742_p7)
}
  0x11   :  { %49 = dma.hbm_to_vmem [thread:$0]  %s5759_s10, 32, %s47_s26, [#allocation3]  }
  0x12   :  { %s4746_s24 = scalar_lea.hbm %s5760_s11, 4096 }
  0x13   :  { %p4747_p8 = scmp.ne.s32.totalorder %s5760_s11, %s4746_s24  ;;  %p4750_p9 = scmp.lt.u32.totalorder %s4746_s24, %s5760_s11 }
  0x15   :  { %p4752_p10 = pnand %p4750_p9, %p4747_p8 }
  0x17   :  { %4755 = shalt.err (!%p4752_p10)
}
  0x18   :  { %s4756_s14 = scalar_lea.vmem %s4849_s28, 4096  ;;  %p4761_p12 = scmp.lt.s32.totalorder %s4849_s28, %s4849_s28 }
  0x19   :  { %p4757_p11 = scmp.ne.s32.totalorder %s4849_s28, %s4756_s14  ;;  %p4762_p13 = scmp.lt.s32.totalorder %s4756_s14, %s4756_s14 }
  0x1b   :  { %p4763_p0 = por %p4762_p13, %p4761_p12 }
  0x1d   :  { %p4764_p1 = pnand %p4763_p0, %p4757_p11 }
  0x1f   :  { %4767 = shalt.err (!%p4764_p1)
}
  0x20   :  { %s4774_s10 = smov 128   ;;  %s4775_s26 = smov 8  }
  0x21   :  { %61 = dma.hbm_to_vmem [thread:$0]  %s5760_s11, 4096, %s4849_s28, [#allocation5], %s4774_s10, %s4774_s10, %s4775_s26  }
  0x22   :  { %4768 = dma.done.wait [#allocation3], 32  }
  0x23   :  { %4769 = vsyncadd [#allocation3], 4294967264 }
  0x24   :  { %4770 = dma.done.wait [#allocation5], 4096  }
  0x25   :  { %4771 = vsyncadd [#allocation5], 4294963200  ;;  %vm79_vm0 = vcmask 261120   ;;  %v70_v0 = vld [vmem:[%s5749_s0] sm:$0xff]  ;;  %v71_v1 = vld [vmem:[%s5749_s0 + $0x8] sm:$0xff]  ;;  %vm296_vm1 = vcmask 523264  }
  0x26   :  { %v72_v2 = vld [vmem:[%s5749_s0 + $0x10] sm:$0xff]  ;;  %v4214_v3 = vpack.c.bf16 %v71_v1, %v70_v0  ;;  %v73_v4 = vld [vmem:[%s5749_s0 + $0x18] sm:$0xff]  ;;  %v75_v5 = vld [vmem:[%s5750_s1] sm:$0xff]  ;;  %vm1223_vm2 = vcmask 130048   ;;  %vm4777_vm3 = vmmov 0   ;;  %vm2220_vm4 = vcmask 64512  }
  0x27   :  { %v4218_v6 = vpack.c.bf16 %v73_v4, %v72_v2  ;;  %3624 = vmatprep.mubr.msk.f32.mxu0 %vm79_vm0, %v75_v5  ;;  %v3116_v7 = vld [vmem:[%s5750_s1 + $0x40] sm:$0xff]  ;;  %v76_v8 = vld [vmem:[%s5750_s1 + $0x8] sm:$0xff]  ;;  %v77_v10 = vld [vmem:[%s5750_s1 + $0x10] sm:$0xff] }
  0x28   :  { %4215 = vmatprep.subr.bf16.mxu0 %v4214_v3  ;;  %4263 = vmatprep.subr.bf16.mxu1 %v4214_v3  ;;  %v3117_v9 = vld [vmem:[%s5750_s1 + $0x48] sm:$0xff]  ;;  %v3118_v11 = vld [vmem:[%s5750_s1 + $0x50] sm:$0xff]  ;;  %v3100_v12 = vld [vmem:[%s5753_s4 + $0x40] sm:$0xff] }
  0x29   :  { %4217 = vmatpush3.bf16.msra.mxu0 %v4214_v3  ;;  %4265 = vmatpush3.bf16.msra.mxu1 %v4214_v3  ;;  %v3101_v13 = vld [vmem:[%s5753_s4 + $0x48] sm:$0xff]  ;;  %v78_v14 = vld [vmem:[%s5750_s1 + $0x18] sm:$0xff]  ;;  %v3092_v16 = vld [vmem:[%s5750_s1 + $0x20] sm:$0xff] }
  0x2a   :  { %4219 = vmatprep.subr.bf16.mxu0 %v4218_v6  ;;  %4267 = vmatprep.subr.bf16.mxu1 %v4218_v6  ;;  %v3119_v15 = vld [vmem:[%s5750_s1 + $0x58] sm:$0xff]  ;;  %v4230_v17 = vpack.c.bf16 %v3101_v13, %v3100_v12  ;;  %v3102_v18 = vld [vmem:[%s5753_s4 + $0x50] sm:$0xff]  ;;  %v3093_v20 = vld [vmem:[%s5750_s1 + $0x28] sm:$0xff] }
  0x2b   :  { %3696 = vmatprep.mubr.msk.f32.mxu1 %vm79_vm0, %v3116_v7  ;;  %v3103_v19 = vld [vmem:[%s5753_s4 + $0x58] sm:$0xff]  ;;  %v3094_v21 = vld [vmem:[%s5750_s1 + $0x30] sm:$0xff]  ;;  %v3104_v24 = vld [vmem:[%s5753_s4 + $0x60] sm:$0xff] }
  0x2c   :  { %v4234_v22 = vpack.c.bf16 %v3103_v19, %v3102_v18  ;;  %v3095_v23 = vld [vmem:[%s5750_s1 + $0x38] sm:$0xff]  ;;  %v3105_v25 = vld [vmem:[%s5753_s4 + $0x68] sm:$0xff]  ;;  %v3106_v27 = vld [vmem:[%s5753_s4 + $0x70] sm:$0xff] }
  0x2d   :  { %4221 = vmatpush3.bf16.msra.mxu0 %v4218_v6  ;;  %4269 = vmatpush3.bf16.msra.mxu1 %v4218_v6  ;;  %v4238_v26 = vpack.c.bf16 %v3105_v25, %v3104_v24  ;;  %v3107_v28 = vld [vmem:[%s5753_s4 + $0x78] sm:$0xff]  ;;  %v177_v30 = vld [vmem:[%s5753_s4] sm:$0xff]  ;;  %v178_v31 = vld [vmem:[%s5753_s4 + $0x8] sm:$0xff] }
  0x2e   :  { %4223 = vmatprep.subr.bf16.mxu0 %v4214_v3  ;;  %v4242_v29 = vpack.c.bf16 %v3107_v28, %v3106_v27  ;;  %v4246_v32 = vpack.c.bf16 %v178_v31, %v177_v30  ;;  %v179_v41 = vld [vmem:[%s5753_s4 + $0x10] sm:$0xff]  ;;  %v180_v42 = vld [vmem:[%s5753_s4 + $0x18] sm:$0xff]  ;;  %v181_v46 = vld [vmem:[%s5753_s4 + $0x20] sm:$0xff]  ;;  %v703_v27 = vlaneseq }
  0x2f   :  { %v4250_v45 = vpack.c.bf16 %v180_v42, %v179_v41  ;;  %v182_v47 = vld [vmem:[%s5753_s4 + $0x28] sm:$0xff]  ;;  %v183_v51 = vld [vmem:[%s5753_s4 + $0x30] sm:$0xff]  ;;  %v184_v52 = vld [vmem:[%s5753_s4 + $0x38] sm:$0xff] }
  0x30   :  { %3625 = vmatmul.mubr.msk.f32.vlgmr.msra.gmra.mrb[0].mxu0 %vm79_vm0, %v76_v8  ;;  %3697 = vmatmul.mubr.msk.f32.vlgmr.msra.gmra.mrb[0].mxu1 %vm79_vm0, %v3117_v9  ;;  %v4254_v50 = vpack.c.bf16 %v182_v47, %v181_v46  ;;  %v4258_v53 = vpack.c.bf16 %v184_v52, %v183_v51  ;;  %v3124_v54 = vld [vmem:[%s5753_s4 + $0x80] sm:$0xff]  ;;  %v3125_v55 = vld [vmem:[%s5753_s4 + $0x88] sm:$0xff]  ;;  %v3126_v57 = vld [vmem:[%s5753_s4 + $0x90] sm:$0xff]  ;;  %v5109_v28 = vshrl.u32 %v703_v27, 7 }
  0x31   :  { %4225 = vmatpush3.bf16.msra.mxu0 %v4214_v3  ;;  %3627 = vmatprep.mubr.msk.f32.mxu0 %vm79_vm0, %v77_v10  ;;  %v4270_v56 = vpack.c.bf16 %v3125_v55, %v3124_v54  ;;  %v3127_v58 = vld [vmem:[%s5753_s4 + $0x98] sm:$0xff]  ;;  %v3128_v60 = vld [vmem:[%s5753_s4 + $0xa0] sm:$0xff]  ;;  %v3129_v61 = vld [vmem:[%s5753_s4 + $0xa8] sm:$0xff] }
  0x32   :  { %4227 = vmatprep.subr.bf16.mxu0 %v4218_v6  ;;  %3699 = vmatprep.mubr.msk.f32.mxu1 %vm79_vm0, %v3118_v11  ;;  %v4274_v59 = vpack.c.bf16 %v3127_v58, %v3126_v57  ;;  %v4278_v62 = vpack.c.bf16 %v3129_v61, %v3128_v60  ;;  %v3130_v63 = vld [vmem:[%s5753_s4 + $0xb0] sm:$0xff]  ;;  %v3131_v0 = vld [vmem:[%s5753_s4 + $0xb8] sm:$0xff]  ;;  %v715_v2 = vld [vmem:[%s5755_s6] sm:$0xff] }
  0x33   :  { %v4282_v1 = vpack.c.bf16 %v3131_v0, %v3130_v63  ;;  %v3142_v3 = vld [vmem:[%s5757_s8 + $0x80] sm:$0xff]  ;;  %v3143_v4 = vld [vmem:[%s5757_s8 + $0x88] sm:$0xff]  ;;  %v3145_v7 = vld [vmem:[%s5757_s8 + $0x98] sm:$0xff] }
  0x34   :  { %3628 = vmatmul.mubr.msk.f32.gmra.mrb[2].mxu0 %vm79_vm0, %v78_v14  ;;  %3700 = vmatmul.mubr.msk.f32.gmra.mrb[2].mxu1 %vm79_vm0, %v3119_v15  ;;  %v5034_v5 = vpack.c.bf16 %v3143_v4, %v3142_v3  ;;  %v3146_v9 = vld [vmem:[%s5757_s8 + $0xa0] sm:$0xff]  ;;  %v3147_v10 = vld [vmem:[%s5757_s8 + $0xa8] sm:$0xff]  ;;  %v3148_v12 = vld [vmem:[%s5757_s8 + $0xb0] sm:$0xff] }
  0x35   :  { %4229 = vmatpush3.bf16.msra.mxu0 %v4218_v6  ;;  %3638 = vmatprep.mubr.msk.f32.mxu0 %vm79_vm0, %v3092_v16  ;;  %v3144_v6 = vld [vmem:[%s5757_s8 + $0x90] sm:$0xff]  ;;  %v5053_v11 = vpack.c.bf16 %v3147_v10, %v3146_v9  ;;  %v3149_v13 = vld [vmem:[%s5757_s8 + $0xb8] sm:$0xff]  ;;  %v3150_v15 = vld [vmem:[%s5757_s8 + $0xc0] sm:$0xff] }
  0x36   :  { %4231 = vmatprep.subr.bf16.mxu0 %v4230_v17  ;;  %3732 = vmatprep.mubr.msk.f32.mxu1 %vm79_vm0, %v715_v2  ;;  %v5042_v8 = vpack.c.bf16 %v3145_v7, %v3144_v6  ;;  %v5063_v14 = vpack.c.bf16 %v3149_v13, %v3148_v12  ;;  %v3151_v16 = vld [vmem:[%s5757_s8 + $0xc8] sm:$0xff]  ;;  %v3152_v18 = vld [vmem:[%s5757_s8 + $0xd0] sm:$0xff]  ;;  %v3153_v19 = vld [vmem:[%s5757_s8 + $0xd8] sm:$0xff] }
  0x37   :  { %v3156_v24 = vld [vmem:[%s5757_s8 + $0xf0] sm:$0xff]  ;;  %v3157_v25 = vld [vmem:[%s5757_s8 + $0xf8] sm:$0xff]  ;;  %v5115_v30 = vld [vmem:[%s5754_s5] sm:$0x7] }
  0x38   :  { %3639 = vmatmul.mubr.msk.f32.vlgmr.msra.gmra.mrb[4].mxu0 %vm79_vm0, %v3093_v20  ;;  %v5083_v20 = vpack.c.bf16 %v3153_v19, %v3152_v18  ;;  %v716_v46 = vld [vmem:[%s5755_s6 + $0x8] sm:$0xff]  ;;  %v3138_v47 = vld [vmem:[%s5755_s6 + $0x10] sm:$0xff]  ;;  %v885_v52 = vld [vmem:[%s5757_s8 + $0x18] sm:$0xff] }
  0x39   :  { %3641 = vmatprep.mubr.msk.f32.mxu0 %vm79_vm0, %v3094_v21  ;;  %4233 = vmatpush3.bf16.msra.mxu0 %v4230_v17  ;;  %v5073_v17 = vpack.c.bf16 %v3151_v16, %v3150_v15  ;;  %v3154_v21 = vld [vmem:[%s5757_s8 + $0xe0] sm:$0xff]  ;;  %v884_v51 = vld [vmem:[%s5757_s8 + $0x10] sm:$0xff]  ;;  %v895_v4 = vld [vmem:[%s5757_s8 + $0x68] sm:$0xff] }
  0x3a   :  { %4235 = vmatprep.subr.bf16.mxu0 %v4234_v22  ;;  %v4306_v54 = vpack.c.bf16 %v885_v52, %v884_v51  ;;  %v886_v55 = vld [vmem:[%s5757_s8 + $0x20] sm:$0xff]  ;;  %v888_v58 = vld [vmem:[%s5757_s8 + $0x30] sm:$0xff]  ;;  %v897_v9 = vld [vmem:[%s5757_s8 + $0x78] sm:$0xff] }
  0x3b   :  { %v890_v61 = vld [vmem:[%s5757_s8 + $0x40] sm:$0xff]  ;;  %v892_v0 = vld [vmem:[%s5757_s8 + $0x50] sm:$0xff] }
  0x3c   :  { %3642 = vmatmul.mubr.msk.f32.gmra.mrb[6].mxu0 %vm79_vm0, %v3095_v23  ;;  %v894_v3 = vld [vmem:[%s5757_s8 + $0x60] sm:$0xff]  ;;  %v896_v7 = vld [vmem:[%s5757_s8 + $0x70] sm:$0xff] }
  0x3d   :  { %4237 = vmatpush3.bf16.msra.mxu0 %v4234_v22  ;;  %v3155_v22 = vld [vmem:[%s5757_s8 + $0xe8] sm:$0xff]  ;;  %v4326_v6 = vpack.c.bf16 %v895_v4, %v894_v3  ;;  %v4330_v10 = vpack.c.bf16 %v897_v9, %v896_v7  ;;  %v3188_v3 = vld [vmem:[%s5753_s4 + $0x140] sm:$0xff]  ;;  %v3190_v7 = vld [vmem:[%s5753_s4 + $0x150] sm:$0xff] }
  0x3e   :  { %4239 = vmatprep.subr.bf16.mxu0 %v4238_v26  ;;  %v5093_v23 = vpack.c.bf16 %v3155_v22, %v3154_v21  ;;  %v3189_v4 = vld [vmem:[%s5753_s4 + $0x148] sm:$0xff]  ;;  %v3191_v9 = vld [vmem:[%s5753_s4 + $0x158] sm:$0xff] }
  0x41   :  { %4241 = vmatpush3.bf16.msra.mxu0 %v4238_v26  ;;  %v5103_v26 = vpack.c.bf16 %v3157_v25, %v3156_v24 }
  0x42   :  { %4243 = vmatprep.subr.bf16.mxu0 %v4242_v29 }
  0x45   :  { %4245 = vmatpush3.bf16.msra.mxu0 %v4242_v29  ;;  %v705_v29 = vsub.s32 0, %v5109_v28 }
  0x46   :  { %4247 = vmatprep.subr.bf16.mxu0 %v4246_v32 }
  0x47   :  { %v706_v31 = vrot.slane %v5115_v30, %v705_v29 }
 0x103   :  { %v3626_v33 = vpop.f32.mrb[0].mxu0  ;;  %v3698_v34 = vpop.f32.mrb[0].mxu1 }
 0x104   :  { %v158_v35 = vpop.f32.mrb[1].mxu0  ;;  %v574_v36 = vpop.f32.mrb[1].mxu1 }
 0x107   :  { %v3629_v37 = vpop.f32.mrb[2].mxu0  ;;  %v3701_v38 = vpop.f32.mrb[2].mxu1 }
 0x108   :  { %v168_v39 = vpop.f32.mrb[3].mxu0  ;;  %v584_v40 = vpop.f32.mrb[3].mxu1 }
 0x10b   :  { %v3640_v43 = vpop.f32.mrb[4].mxu0 }
 0x10c   :  { %v268_v44 = vpop.f32.mrb[5].mxu0 }
 0x10d   :  { %3660 = vmatprep.mubr.msk.f32.mxu0 %vm296_vm1, %v268_v44 }
 0x10e   :  { %3661 = vmatmul.mubr.msk.f32.vlgmr.msra.gmra.mrb[8].mxu0 %vm296_vm1, %v3640_v43 }
 0x10f   :  { %4249 = vmatpush3.bf16.msra.mxu0 %v4246_v32  ;;  %v3643_v48 = vpop.f32.mrb[6].mxu0 }
 0x110   :  { %v278_v49 = vpop.f32.mrb[7].mxu0  ;;  %4251 = vmatprep.subr.bf16.mxu0 %v4250_v45 }
 0x111   :  { %3663 = vmatprep.mubr.msk.f32.mxu0 %vm296_vm1, %v278_v49  ;;  %v883_v49 = vld [vmem:[%s5757_s8 + $0x8] sm:$0xff] }
 0x112   :  { %3664 = vmatmul.mubr.msk.f32.gmra.mrb[10].mxu0 %vm296_vm1, %v3643_v48  ;;  %v882_v48 = vld [vmem:[%s5757_s8] sm:$0xff] }
 0x113   :  { %4253 = vmatpush3.bf16.msra.mxu0 %v4250_v45  ;;  %3682 = vmatprep.mubr.msk.f32.mxu0 %vm296_vm1, %v158_v35 }
 0x114   :  { %4255 = vmatprep.subr.bf16.mxu0 %v4254_v50 }
 0x117   :  { %4257 = vmatpush3.bf16.msra.mxu0 %v4254_v50  ;;  %v4302_v50 = vpack.c.bf16 %v883_v49, %v882_v48  ;;  %v3160_v49 = vld [vmem:[%s5753_s4 + $0xc0] sm:$0xff] }
 0x118   :  { %4259 = vmatprep.subr.bf16.mxu0 %v4258_v53 }
 0x11b   :  { %4261 = vmatpush3.bf16.msra.mxu0 %v4258_v53  ;;  %v3139_v53 = vld [vmem:[%s5755_s6 + $0x18] sm:$0xff] }
 0x11c   :  { %4271 = vmatprep.subr.bf16.mxu0 %v4270_v56 }
 0x11e   :  { %3683 = vmatmul.mubr.msk.f32.vlgmr.msra.gmra.mrb[8].mxu0 %vm296_vm1, %v3626_v33 }
 0x11f   :  { %3685 = vmatprep.mubr.msk.f32.mxu0 %vm296_vm1, %v168_v39  ;;  %4273 = vmatpush3.bf16.msra.mxu0 %v4270_v56  ;;  %v887_v56 = vld [vmem:[%s5757_s8 + $0x28] sm:$0xff] }
 0x120   :  { %4275 = vmatprep.subr.bf16.mxu0 %v4274_v59  ;;  %v4310_v57 = vpack.c.bf16 %v887_v56, %v886_v55  ;;  %v3162_v56 = vld [vmem:[%s5753_s4 + $0xd0] sm:$0xff] }
 0x122   :  { %3686 = vmatmul.mubr.msk.f32.gmra.mrb[10].mxu0 %vm296_vm1, %v3629_v37 }
 0x123   :  { %4277 = vmatpush3.bf16.msra.mxu0 %v4274_v59  ;;  %3718 = vmatprep.mubr.msk.f32.mxu0 %vm296_vm1, %v574_v36  ;;  %v889_v59 = vld [vmem:[%s5757_s8 + $0x38] sm:$0xff] }
 0x124   :  { %4279 = vmatprep.subr.bf16.mxu0 %v4278_v62  ;;  %v4314_v60 = vpack.c.bf16 %v889_v59, %v888_v58 }
 0x127   :  { %4281 = vmatpush3.bf16.msra.mxu0 %v4278_v62  ;;  %v891_v62 = vld [vmem:[%s5757_s8 + $0x48] sm:$0xff] }
 0x128   :  { %4283 = vmatprep.subr.bf16.mxu0 %v4282_v1  ;;  %v4318_v63 = vpack.c.bf16 %v891_v62, %v890_v61  ;;  %v3164_v61 = vld [vmem:[%s5753_s4 + $0xe0] sm:$0xff]  ;;  %v3165_v62 = vld [vmem:[%s5753_s4 + $0xe8] sm:$0xff] }
 0x12b   :  { %4285 = vmatpush3.bf16.msra.mxu0 %v4282_v1  ;;  %v893_v1 = vld [vmem:[%s5757_s8 + $0x58] sm:$0xff] }
 0x12c   :  { %4335 = vmatprep.subr.bf16.mxu0 %v5034_v5  ;;  %v4322_v2 = vpack.c.bf16 %v893_v1, %v892_v0  ;;  %v3166_v0 = vld [vmem:[%s5753_s4 + $0xf0] sm:$0xff]  ;;  %v3167_v1 = vld [vmem:[%s5753_s4 + $0xf8] sm:$0xff] }
 0x12e   :  { %3719 = vmatmul.mubr.msk.f32.vlgmr.msra.gmra.mrb[8].mxu0 %vm296_vm1, %v3698_v34 }
 0x12f   :  { %3721 = vmatprep.mubr.msk.f32.mxu0 %vm296_vm1, %v584_v40  ;;  %4337 = vmatpush3.bf16.msra.mxu0 %v5034_v5 }
 0x130   :  { %4339 = vmatprep.subr.bf16.mxu0 %v5042_v8 }
 0x132   :  { %3722 = vmatmul.mubr.msk.f32.gmra.mrb[10].mxu0 %vm296_vm1, %v3701_v38 }
 0x133   :  { %4341 = vmatpush3.bf16.msra.mxu0 %v5042_v8 }
 0x134   :  { %4343 = vmatprep.subr.bf16.mxu0 %v5053_v11 }
 0x137   :  { %4345 = vmatpush3.bf16.msra.mxu0 %v5053_v11 }
 0x138   :  { %4347 = vmatprep.subr.bf16.mxu0 %v5063_v14 }
 0x13b   :  { %4349 = vmatpush3.bf16.msra.mxu0 %v5063_v14 }
 0x13c   :  { %4351 = vmatprep.subr.bf16.mxu0 %v5073_v17 }
 0x13f   :  { %4353 = vmatpush3.bf16.msra.mxu0 %v5073_v17 }
 0x140   :  { %4355 = vmatprep.subr.bf16.mxu0 %v5083_v20 }
 0x143   :  { %4357 = vmatpush3.bf16.msra.mxu0 %v5083_v20 }
 0x144   :  { %4359 = vmatprep.subr.bf16.mxu0 %v5093_v23 }
 0x147   :  { %4361 = vmatpush3.bf16.msra.mxu0 %v5093_v23 }
 0x148   :  { %4363 = vmatprep.subr.bf16.mxu0 %v5103_v26 }
 0x14b   :  { %4365 = vmatpush3.bf16.msra.mxu0 %v5103_v26 }
 0x14c   :  { %4399 = vmatprep.subr.bf16.mxu0 %v5034_v5 }
 0x201   :  { %v3720_v32 = vpop.f32.mrb[8].mxu0 }
 0x202   :  { %v708_v33 = vadd.f32 %v3720_v32, %v706_v31  ;;  %v680_v34 = vpop.f32.mrb[9].mxu0 }
 0x203   :  { %v707_v35 = vadd.f32 %v706_v31, %v680_v34  ;;  %v3173_v34 = vld [vmem:[%s5753_s4 + $0x108] sm:$0xff] }
 0x204   :  { %v712_v36 = vmax.f32 %v708_v33, 0.0  ;;  %v3172_v33 = vld [vmem:[%s5753_s4 + $0x100] sm:$0xff] }
 0x205   :  { %v711_v37 = vmax.f32 %v707_v35, 0.0  ;;  %v3723_v38 = vpop.f32.mrb[10].mxu0  ;;  %v1222_v35 = vld [vmem:[%s5751_s2 + $0x8] sm:$0xff] }
 0x206   :  { %v710_v39 = vadd.f32 %v3723_v38, %v706_v31  ;;  %v690_v40 = vpop.f32.mrb[11].mxu0  ;;  %v4438_v38 = vpack.c.bf16 %v3173_v34, %v3172_v33  ;;  %v3226_v33 = vld [vmem:[%s5757_s8 + $0x1c8] sm:$0xff] }
 0x207   :  { %v4286_v41 = vpack.c.bf16 %v712_v36, %v711_v37  ;;  %v709_v42 = vadd.f32 %v706_v31, %v690_v40  ;;  %v3185_v36 = vld [vmem:[%s5751_s2 + $0x28] sm:$0xff]  ;;  %v3168_v37 = vld [vmem:[%s5751_s2 + $0x10] sm:$0xff]  ;;  %v3175_v40 = vld [vmem:[%s5753_s4 + $0x118] sm:$0xff] }
 0x208   :  { %v714_v43 = vmax.f32 %v710_v39, 0.0  ;;  %v3174_v39 = vld [vmem:[%s5753_s4 + $0x110] sm:$0xff] }
 0x209   :  { %v713_v44 = vmax.f32 %v709_v42, 0.0  ;;  %4287 = vmatprep.subr.bf16.mxu1 %v4286_v41  ;;  %v4442_v42 = vpack.c.bf16 %v3175_v40, %v3174_v39  ;;  %v3230_v39 = vld [vmem:[%s5757_s8 + $0x1e8] sm:$0xff] }
 0x20a   :  { %4289 = vmatpush3.bf16.msra.mxu1 %v4286_v41 }
 0x20b   :  { %v4290_v45 = vpack.c.bf16 %v714_v43, %v713_v44  ;;  %v3176_v43 = vld [vmem:[%s5753_s4 + $0x120] sm:$0xff]  ;;  %v3177_v44 = vld [vmem:[%s5753_s4 + $0x128] sm:$0xff] }
 0x20d   :  { %4291 = vmatprep.subr.bf16.mxu1 %v4290_v45 }
 0x20e   :  { %4293 = vmatpush3.bf16.msra.mxu1 %v4290_v45 }
 0x20f   :  { %4295 = vmatprep.subr.bf16.mxu1 %v4286_v41 }
 0x211   :  { %3733 = vmatmul.mubr.msk.f32.vlgmr.msra.gmra.mrb[4].mxu1 %vm79_vm0, %v716_v46  ;;  %v3178_v46 = vld [vmem:[%s5753_s4 + $0x130] sm:$0xff] }
 0x212   :  { %4297 = vmatpush3.bf16.msra.mxu1 %v4286_v41  ;;  %3743 = vmatprep.mubr.msk.f32.mxu1 %vm79_vm0, %v3138_v47  ;;  %v3169_v41 = vld [vmem:[%s5751_s2 + $0x18] sm:$0xff] }
 0x213   :  { %4299 = vmatprep.subr.bf16.mxu1 %v4290_v45  ;;  %v3179_v47 = vld [vmem:[%s5753_s4 + $0x138] sm:$0xff] }
 0x214   :  { %v4450_v48 = vpack.c.bf16 %v3179_v47, %v3178_v46 }
 0x216   :  { %4301 = vmatpush3.bf16.msra.mxu1 %v4290_v45  ;;  %v4446_v45 = vpack.c.bf16 %v3177_v44, %v3176_v43  ;;  %v1747_v44 = vsub.s32 1, %v5109_v28 }
 0x217   :  { %4303 = vmatprep.subr.bf16.mxu1 %v4302_v50 }
 0x219   :  { %3744 = vmatmul.mubr.msk.f32.vlgmr.msra.gmra.mrb[6].mxu1 %vm79_vm0, %v3139_v53 }
 0x21a   :  { %4305 = vmatpush3.bf16.msra.mxu1 %v4302_v50 }
 0x21b   :  { %4307 = vmatprep.subr.bf16.mxu1 %v4306_v54 }
 0x21e   :  { %4309 = vmatpush3.bf16.msra.mxu1 %v4306_v54 }
 0x21f   :  { %4311 = vmatprep.subr.bf16.mxu1 %v4310_v57 }
 0x222   :  { %4313 = vmatpush3.bf16.msra.mxu1 %v4310_v57 }
 0x223   :  { %4315 = vmatprep.subr.bf16.mxu1 %v4314_v60 }
 0x226   :  { %4317 = vmatpush3.bf16.msra.mxu1 %v4314_v60 }
 0x227   :  { %4319 = vmatprep.subr.bf16.mxu1 %v4318_v63 }
 0x22a   :  { %4321 = vmatpush3.bf16.msra.mxu1 %v4318_v63 }
 0x22b   :  { %4323 = vmatprep.subr.bf16.mxu1 %v4322_v2 }
 0x22e   :  { %4325 = vmatpush3.bf16.msra.mxu1 %v4322_v2 }
 0x22f   :  { %4327 = vmatprep.subr.bf16.mxu1 %v4326_v6 }
 0x232   :  { %4329 = vmatpush3.bf16.msra.mxu1 %v4326_v6 }
 0x233   :  { %4331 = vmatprep.subr.bf16.mxu1 %v4330_v10 }
 0x236   :  { %4333 = vmatpush3.bf16.msra.mxu1 %v4330_v10 }
 0x237   :  { %4367 = vmatprep.subr.bf16.mxu1 %v4302_v50 }
 0x2e4   :  { %v3734_v12 = vpop.f32.mrb[4].mxu1 }
 0x2e5   :  { %v789_v13 = vpop.f32.mrb[5].mxu1 }
 0x2e6   :  { %3778 = vmatprep.mubr.f32.mxu1 %v789_v13  ;;  %3813 = vmatprep.mubr.f32.mxu0 %v789_v13  ;;  %v3193_v13 = vld [vmem:[%s5753_s4 + $0x168] sm:$0xff] }
 0x2e7   :  { %3779 = vmatmul.mubr.f32.vlgmr.msra.gmra.mrb[8].mxu1 %v3734_v12  ;;  %3814 = vmatmul.mubr.f32.vlgmr.msra.gmra.mrb[12].mxu0 %v3734_v12  ;;  %v3192_v12 = vld [vmem:[%s5753_s4 + $0x160] sm:$0xff] }
 0x2e8   :  { %4369 = vmatpush3.bf16.msra.mxu1 %v4302_v50  ;;  %4401 = vmatpush3.bf16.msra.mxu0 %v5034_v5  ;;  %v1221_v5 = vld [vmem:[%s5751_s2] sm:$0xff]  ;;  %v3161_v50 = vld [vmem:[%s5753_s4 + $0xc8] sm:$0xff] }
 0x2e9   :  { %4371 = vmatprep.subr.bf16.mxu1 %v4306_v54  ;;  %4403 = vmatprep.subr.bf16.mxu0 %v5042_v8  ;;  %v4454_v51 = vpack.c.bf16 %v3161_v50, %v3160_v49 }
 0x2ec   :  { %4373 = vmatpush3.bf16.msra.mxu1 %v4306_v54  ;;  %4405 = vmatpush3.bf16.msra.mxu0 %v5042_v8  ;;  %v3745_v15 = vpop.f32.mrb[6].mxu1  ;;  %v3184_v8 = vld [vmem:[%s5751_s2 + $0x20] sm:$0xff] }
 0x2ed   :  { %4375 = vmatprep.subr.bf16.mxu1 %v4310_v57  ;;  %4407 = vmatprep.subr.bf16.mxu0 %v5053_v11  ;;  %v873_v16 = vpop.f32.mrb[7].mxu1 }
 0x2ee   :  { %3848 = vmatprep.mubr.f32.mxu1 %v873_v16  ;;  %3883 = vmatprep.mubr.f32.mxu0 %v873_v16  ;;  %v3194_v16 = vld [vmem:[%s5753_s4 + $0x170] sm:$0xff] }
 0x2f0   :  { %4377 = vmatpush3.bf16.msra.mxu1 %v4310_v57  ;;  %4409 = vmatpush3.bf16.msra.mxu0 %v5053_v11  ;;  %v3163_v57 = vld [vmem:[%s5753_s4 + $0xd8] sm:$0xff] }
 0x2f1   :  { %4379 = vmatprep.subr.bf16.mxu1 %v4314_v60  ;;  %4411 = vmatprep.subr.bf16.mxu0 %v5063_v14 }
 0x2f4   :  { %4381 = vmatpush3.bf16.msra.mxu1 %v4314_v60  ;;  %4413 = vmatpush3.bf16.msra.mxu0 %v5063_v14  ;;  %v4458_v60 = vpack.c.bf16 %v3163_v57, %v3162_v56  ;;  %v3203_v57 = vld [vmem:[%s5757_s8 + $0x110] sm:$0xff] }
 0x2f5   :  { %4383 = vmatprep.subr.bf16.mxu1 %v4318_v63  ;;  %4415 = vmatprep.subr.bf16.mxu0 %v5073_v17 }
 0x2f8   :  { %4385 = vmatpush3.bf16.msra.mxu1 %v4318_v63  ;;  %4417 = vmatpush3.bf16.msra.mxu0 %v5073_v17  ;;  %v4462_v63 = vpack.c.bf16 %v3165_v62, %v3164_v61  ;;  %v3206_v61 = vld [vmem:[%s5757_s8 + $0x128] sm:$0xff] }
 0x2f9   :  { %4387 = vmatprep.subr.bf16.mxu1 %v4322_v2  ;;  %4419 = vmatprep.subr.bf16.mxu0 %v5083_v20 }
 0x2fc   :  { %4389 = vmatpush3.bf16.msra.mxu1 %v4322_v2  ;;  %4421 = vmatpush3.bf16.msra.mxu0 %v5083_v20  ;;  %v4466_v2 = vpack.c.bf16 %v3167_v1, %v3166_v0  ;;  %v3208_v0 = vld [vmem:[%s5757_s8 + $0x138] sm:$0xff] }
 0x2fd   :  { %4391 = vmatprep.subr.bf16.mxu1 %v4326_v6  ;;  %4423 = vmatprep.subr.bf16.mxu0 %v5093_v23 }
 0x300   :  { %4393 = vmatpush3.bf16.msra.mxu1 %v4326_v6  ;;  %4425 = vmatpush3.bf16.msra.mxu0 %v5093_v23  ;;  %v4474_v6 = vpack.c.bf16 %v3189_v4, %v3188_v3  ;;  %v3210_v3 = vld [vmem:[%s5757_s8 + $0x148] sm:$0xff] }
 0x301   :  { %4395 = vmatprep.subr.bf16.mxu1 %v4330_v10  ;;  %4427 = vmatprep.subr.bf16.mxu0 %v5103_v26 }
 0x304   :  { %4397 = vmatpush3.bf16.msra.mxu1 %v4330_v10  ;;  %4429 = vmatpush3.bf16.msra.mxu0 %v5103_v26  ;;  %v4478_v10 = vpack.c.bf16 %v3191_v9, %v3190_v7  ;;  %v3212_v7 = vld [vmem:[%s5757_s8 + $0x158] sm:$0xff] }
 0x307   :  { %3849 = vmatmul.mubr.f32.vlgmr.msra.gmra.mrb[10].mxu1 %v3745_v15  ;;  %3884 = vmatmul.mubr.f32.vlgmr.msra.gmra.mrb[14].mxu0 %v3745_v15  ;;  %v4482_v15 = vpack.c.bf16 %v3193_v13, %v3192_v12  ;;  %v3214_v12 = vld [vmem:[%s5757_s8 + $0x168] sm:$0xff] }
 0x308   :  { %3890 = vmatprep.mubr.msk.f32.mxu1 %vm1223_vm2, %v1221_v5  ;;  %3942 = vmatprep.mubr.msk.f32.mxu0 %vm1223_vm2, %v3184_v8  ;;  %v3195_v5 = vld [vmem:[%s5753_s4 + $0x178] sm:$0xff] }
 0x309   :  { %v4486_v8 = vpack.c.bf16 %v3195_v5, %v3194_v16  ;;  %v3216_v16 = vld [vmem:[%s5757_s8 + $0x178] sm:$0xff] }
 0x3ba   :  { %v3780_v11 = vpop.f32.mrb[8].mxu1  ;;  %v3815_v14 = vpop.f32.mrb[12].mxu0 }
 0x3bb   :  { %v1066_v17 = vmax.f32 %v3780_v11, %v3815_v14  ;;  %v964_v18 = vpop.f32.mrb[9].mxu1  ;;  %v1056_v19 = vpop.f32.mrb[13].mxu0  ;;  %v4776_v11 = vmov 0.0|0.0   ;;  %v4778_v14 = vmov 0.0  }
 0x3bc   :  { %v1065_v20 = vmax.f32 %v964_v18, %v1056_v19  ;;  %v3218_v18 = vld [vmem:[%s5757_s8 + $0x188] sm:$0xff] }
 0x3da   :  { %v3850_v21 = vpop.f32.mrb[10].mxu1  ;;  %v3885_v22 = vpop.f32.mrb[14].mxu0 }
 0x3db   :  { %v1218_v23 = vmax.f32 %v3850_v21, %v3885_v22  ;;  %v1133_v24 = vpop.f32.mrb[11].mxu1  ;;  %v1208_v25 = vpop.f32.mrb[15].mxu0  ;;  %v3220_v21 = vld [vmem:[%s5757_s8 + $0x198] sm:$0xff] }
 0x3dc   :  { %v1217_v26 = vmax.f32 %v1133_v24, %v1208_v25  ;;  %v3222_v24 = vld [vmem:[%s5757_s8 + $0x1a8] sm:$0xff] }
 0x3dd   :  { %v1220_v27 = vmax.f32 %v1066_v17, %v1218_v23  ;;  %v3217_v17 = vld [vmem:[%s5757_s8 + $0x180] sm:$0xff] }
 0x3de   :  { %v1219_v31 = vmax.f32 %v1065_v20, %v1217_v26  ;;  %v5309_v19 = vpack.c.bf16 %v3218_v18, %v3217_v17  ;;  %v3219_v20 = vld [vmem:[%s5757_s8 + $0x190] sm:$0xff]  ;;  %v3221_v23 = vld [vmem:[%s5757_s8 + $0x1a0] sm:$0xff] }
 0x3df   :  { %v5319_v22 = vpack.c.bf16 %v3220_v21, %v3219_v20  ;;  %v5329_v25 = vpack.c.bf16 %v3222_v24, %v3221_v23  ;;  %v3223_v26 = vld [vmem:[%s5757_s8 + $0x1b0] sm:$0xff]  ;;  %v3235_v21 = vld [vmem:[%s5753_s4 + $0x188] sm:$0xff]  ;;  %v3237_v24 = vld [vmem:[%s5753_s4 + $0x198] sm:$0xff] }
 0x3e0   :  { %v4430_v32 = vpack.c.bf16 %v1220_v27, %v1219_v31  ;;  %v3224_v27 = vld [vmem:[%s5757_s8 + $0x1b8] sm:$0xff]  ;;  %v3236_v23 = vld [vmem:[%s5753_s4 + $0x190] sm:$0xff] }
 0x3e1   :  { %v5339_v31 = vpack.c.bf16 %v3224_v27, %v3223_v26  ;;  %v3238_v26 = vld [vmem:[%s5753_s4 + $0x1a0] sm:$0xff]  ;;  %v3239_v27 = vld [vmem:[%s5753_s4 + $0x1a8] sm:$0xff] }
 0x3e2   :  { %4431 = vmatprep.subr.bf16.mxu1 %v4430_v32  ;;  %4471 = vmatprep.subr.bf16.mxu0 %v4430_v32 }
 0x3e3   :  { %4433 = vmatpush3.bf16.msra.mxu1 %v4430_v32  ;;  %4473 = vmatpush3.bf16.msra.mxu0 %v4430_v32 }
 0x3e4   :  { %4435 = vmatprep.subr.bf16.mxu1 %v4430_v32  ;;  %4490 = vmatprep.subr.bf16.mxu0 %v4776_v11 }
 0x3e6   :  { %3891 = vmatmul.mubr.msk.f32.vlgmr.msra.gmra.mrb[12].mxu1 %vm1223_vm2, %v1222_v35  ;;  %3943 = vmatmul.mubr.msk.f32.vlgmr.msra.gmra.mrb[16].mxu0 %vm1223_vm2, %v3185_v36  ;;  %v3227_v35 = vld [vmem:[%s5757_s8 + $0x1d0] sm:$0xff]  ;;  %v3228_v36 = vld [vmem:[%s5757_s8 + $0x1d8] sm:$0xff] }
 0x3e7   :  { %4437 = vmatpush3.bf16.msra.mxu1 %v4430_v32  ;;  %3897 = vmatprep.mubr.msk.f32.mxu1 %vm1223_vm2, %v3168_v37  ;;  %v3225_v32 = vld [vmem:[%s5757_s8 + $0x1c0] sm:$0xff]  ;;  %v5359_v37 = vpack.c.bf16 %v3228_v36, %v3227_v35 }
 0x3e8   :  { %4439 = vmatprep.subr.bf16.mxu1 %v4438_v38  ;;  %3968 = vmatprep.mubr.msk.f32.mxu0 %vm4777_vm3, %v4778_v14  ;;  %v5349_v34 = vpack.c.bf16 %v3226_v33, %v3225_v32  ;;  %v3240_v32 = vld [vmem:[%s5753_s4 + $0x1b0] sm:$0xff]  ;;  %v3241_v33 = vld [vmem:[%s5753_s4 + $0x1b8] sm:$0xff] }
 0x3ea   :  { %3898 = vmatmul.mubr.msk.f32.vlgmr.msra.gmra.mrb[14].mxu1 %vm1223_vm2, %v3169_v41  ;;  %v3231_v41 = vld [vmem:[%s5757_s8 + $0x1f0] sm:$0xff] }
 0x3eb   :  { %4441 = vmatpush3.bf16.msra.mxu1 %v4438_v38  ;;  %v3229_v38 = vld [vmem:[%s5757_s8 + $0x1e0] sm:$0xff] }
 0x3ec   :  { %4443 = vmatprep.subr.bf16.mxu1 %v4442_v42  ;;  %v5369_v40 = vpack.c.bf16 %v3230_v39, %v3229_v38 }
 0x3ef   :  { %4445 = vmatpush3.bf16.msra.mxu1 %v4442_v42  ;;  %v3232_v42 = vld [vmem:[%s5757_s8 + $0x1f8] sm:$0xff] }
 0x3f0   :  { %4447 = vmatprep.subr.bf16.mxu1 %v4446_v45  ;;  %v5379_v43 = vpack.c.bf16 %v3232_v42, %v3231_v41 }
 0x3f3   :  { %4449 = vmatpush3.bf16.msra.mxu1 %v4446_v45  ;;  %v1748_v45 = vrot.slane %v5115_v30, %v1747_v44  ;;  %v3202_v30 = vld [vmem:[%s5757_s8 + $0x108] sm:$0xff] }
 0x3f4   :  { %4451 = vmatprep.subr.bf16.mxu1 %v4450_v48 }
 0x3f7   :  { %4453 = vmatpush3.bf16.msra.mxu1 %v4450_v48 }
 0x3f8   :  { %4455 = vmatprep.subr.bf16.mxu1 %v4454_v51 }
 0x4b9   :  { %v3892_v52 = vpop.f32.mrb[12].mxu1  ;;  %v3944_v53 = vpop.f32.mrb[16].mxu0 }
 0x4ba   :  { %v1296_v54 = vpop.f32.mrb[13].mxu1  ;;  %v1644_v55 = vpop.f32.mrb[17].mxu0 }
 0x4bd   :  { %v3899_v58 = vpop.f32.mrb[14].mxu1 }
 0x4be   :  { %v1389_v59 = vpop.f32.mrb[15].mxu1 }
 0x4bf   :  { %3916 = vmatprep.mubr.msk.f32.mxu1 %vm296_vm1, %v1389_v59 }
 0x4c0   :  { %3917 = vmatmul.mubr.msk.f32.vlgmr.msra.gmra.mrb[16].mxu1 %vm296_vm1, %v3899_v58  ;;  %v3204_v58 = vld [vmem:[%s5757_s8 + $0x118] sm:$0xff] }
 0x4c1   :  { %4457 = vmatpush3.bf16.msra.mxu1 %v4454_v51  ;;  %3935 = vmatprep.mubr.msk.f32.mxu1 %vm296_vm1, %v1296_v54  ;;  %v3201_v54 = vld [vmem:[%s5757_s8 + $0x100] sm:$0xff]  ;;  %v4500_v59 = vpack.c.bf16 %v3204_v58, %v3203_v57  ;;  %v3250_v57 = vld [vmem:[%s5753_s4 + $0x1f0] sm:$0xff]  ;;  %v3251_v58 = vld [vmem:[%s5753_s4 + $0x1f8] sm:$0xff] }
 0x4c2   :  { %4459 = vmatprep.subr.bf16.mxu1 %v4458_v60  ;;  %v4497_v56 = vpack.c.bf16 %v3202_v30, %v3201_v54  ;;  %v3248_v30 = vld [vmem:[%s5753_s4 + $0x1e0] sm:$0xff] }
 0x4c5   :  { %4461 = vmatpush3.bf16.msra.mxu1 %v4458_v60  ;;  %v3205_v60 = vld [vmem:[%s5757_s8 + $0x120] sm:$0xff] }
 0x4c6   :  { %4463 = vmatprep.subr.bf16.mxu1 %v4462_v63  ;;  %v4503_v62 = vpack.c.bf16 %v3206_v61, %v3205_v60  ;;  %v3267_v61 = vld [vmem:[%s5753_s4 + $0x240] sm:$0xff] }
 0x4c9   :  { %4465 = vmatpush3.bf16.msra.mxu1 %v4462_v63  ;;  %v3207_v63 = vld [vmem:[%s5757_s8 + $0x130] sm:$0xff] }
 0x4ca   :  { %4467 = vmatprep.subr.bf16.mxu1 %v4466_v2  ;;  %v4506_v1 = vpack.c.bf16 %v3208_v0, %v3207_v63  ;;  %v3265_v0 = vld [vmem:[%s5752_s3 + $0x6] sm:$0x3] }
 0x4cd   :  { %4469 = vmatpush3.bf16.msra.mxu1 %v4466_v2  ;;  %v3209_v2 = vld [vmem:[%s5757_s8 + $0x140] sm:$0xff] }
 0x4ce   :  { %4475 = vmatprep.subr.bf16.mxu1 %v4474_v6  ;;  %v4509_v4 = vpack.c.bf16 %v3210_v3, %v3209_v2  ;;  %v3257_v2 = vld [vmem:[%s5753_s4 + $0x208] sm:$0xff] }
 0x4d0   :  { %3936 = vmatmul.mubr.msk.f32.vlgmr.msra.gmra.mrb[16].mxu1 %vm296_vm1, %v3892_v52 }
 0x4d1   :  { %4477 = vmatpush3.bf16.msra.mxu1 %v4474_v6  ;;  %3961 = vmatprep.mubr.msk.f32.mxu1 %vm296_vm1, %v1644_v55  ;;  %v3199_v55 = vld [vmem:[%s5756_s7 + $0x8] sm:$0xff]  ;;  %v3211_v6 = vld [vmem:[%s5757_s8 + $0x150] sm:$0xff] }
 0x4d2   :  { %4479 = vmatprep.subr.bf16.mxu1 %v4478_v10  ;;  %v4512_v9 = vpack.c.bf16 %v3212_v7, %v3211_v6  ;;  %v3269_v6 = vld [vmem:[%s5753_s4 + $0x250] sm:$0xff]  ;;  %v3270_v7 = vld [vmem:[%s5753_s4 + $0x258] sm:$0xff] }
 0x4d5   :  { %4481 = vmatpush3.bf16.msra.mxu1 %v4478_v10  ;;  %v3213_v10 = vld [vmem:[%s5757_s8 + $0x160] sm:$0xff] }
 0x4d6   :  { %4483 = vmatprep.subr.bf16.mxu1 %v4482_v15  ;;  %v4515_v13 = vpack.c.bf16 %v3214_v12, %v3213_v10  ;;  %v3254_v10 = vld [vmem:[%s5752_s3 + $0x4] sm:$0x3] }
 0x4d9   :  { %4485 = vmatpush3.bf16.msra.mxu1 %v4482_v15  ;;  %v3215_v15 = vld [vmem:[%s5757_s8 + $0x170] sm:$0xff] }
 0x4da   :  { %4487 = vmatprep.subr.bf16.mxu1 %v4486_v8  ;;  %v4518_v5 = vpack.c.bf16 %v3216_v16, %v3215_v15  ;;  %v3259_v15 = vld [vmem:[%s5753_s4 + $0x218] sm:$0xff]  ;;  %v4632_v16 = vpack.c.bf16 %v3270_v7, %v3269_v6 }
 0x4dd   :  { %4489 = vmatpush3.bf16.msra.mxu1 %v4486_v8 }
 0x4de   :  { %4520 = vmatprep.subr.bf16.mxu1 %v4776_v11 }
 0x4e0   :  { %3962 = vmatmul.mubr.msk.f32.vlgmr.msra.gmra.mrb[16].mxu1 %vm296_vm1, %v3944_v53  ;;  %v1753_v53 = vld [vmem:[%s5756_s7] sm:$0xff] }
 0x4e1   :  { %4045 = vmatprep.mubr.msk.f32.mxu1 %vm4777_vm3, %v4778_v14  ;;  %4522 = vmatpush3.bf16.msra.mxu1 %v5309_v19 }
 0x4e2   :  { %4523 = vmatprep.subr.bf16.mxu1 %v4776_v11 }
 0x4e5   :  { %4525 = vmatpush3.bf16.msra.mxu1 %v5319_v22 }
 0x4e6   :  { %4526 = vmatprep.subr.bf16.mxu1 %v4776_v11 }
 0x4e9   :  { %4528 = vmatpush3.bf16.msra.mxu1 %v5329_v25 }
 0x4ea   :  { %4529 = vmatprep.subr.bf16.mxu1 %v4776_v11 }
 0x4ed   :  { %4531 = vmatpush3.bf16.msra.mxu1 %v5339_v31 }
 0x4ee   :  { %4532 = vmatprep.subr.bf16.mxu1 %v4776_v11 }
 0x4f1   :  { %4534 = vmatpush3.bf16.msra.mxu1 %v5349_v34 }
 0x4f2   :  { %4535 = vmatprep.subr.bf16.mxu1 %v4776_v11 }
 0x4f5   :  { %4537 = vmatpush3.bf16.msra.mxu1 %v5359_v37 }
 0x4f6   :  { %4538 = vmatprep.subr.bf16.mxu1 %v4776_v11 }
 0x4f9   :  { %4540 = vmatpush3.bf16.msra.mxu1 %v5369_v40 }
 0x4fa   :  { %4541 = vmatprep.subr.bf16.mxu1 %v4776_v11 }
 0x4fd   :  { %4543 = vmatpush3.bf16.msra.mxu1 %v5379_v43 }
 0x4fe   :  { %4568 = vmatprep.subr.bf16.mxu1 %v4776_v11 }
 0x5b3   :  { %v3963_v46 = vpop.f32.mrb[16].mxu1 }
 0x5b4   :  { %v1750_v47 = vadd.f32 %v3963_v46, %v1748_v45  ;;  %v1734_v48 = vpop.f32.mrb[17].mxu1 }
 0x5b5   :  { %v1749_v49 = vadd.f32 %v1748_v45, %v1734_v48  ;;  %v3244_v48 = vld [vmem:[%s5753_s4 + $0x1c0] sm:$0xff] }
 0x5b6   :  { %v1752_v50 = vmax.f32 %v1750_v47, 0.0  ;;  %v2219_v47 = vld [vmem:[%s5752_s3] sm:$0x3] }
 0x5b7   :  { %v1751_v51 = vmax.f32 %v1749_v49, 0.0  ;;  %v3245_v49 = vld [vmem:[%s5753_s4 + $0x1c8] sm:$0xff] }
 0x5b9   :  { %v4491_v52 = vpack.c.bf16 %v1752_v50, %v1751_v51  ;;  %v3242_v50 = vld [vmem:[%s5752_s3 + $0x2] sm:$0x3]  ;;  %v4593_v51 = vpack.c.bf16 %v3245_v49, %v3244_v48  ;;  %v2861_v48 = vld [vmem:[%s5758_s9 + $0x30] sm:$0xff] }
 0x5bb   :  { %4492 = vmatpush3.bf16.msra.mxu0 %v4491_v52 }
 0x5bc   :  { %4493 = vmatprep.subr.bf16.mxu0 %v4776_v11 }
 0x5be   :  { %3969 = vmatmul.mubr.msk.f32.vlgmr.msra.gmra.mrb[18].mxu0 %vm1223_vm2, %v1753_v53  ;;  %v3247_v53 = vld [vmem:[%s5753_s4 + $0x1d8] sm:$0xff] }
 0x5bf   :  { %4495 = vmatpush3.bf16.msra.mxu0 %v4491_v52  ;;  %3975 = vmatprep.mubr.msk.f32.mxu0 %vm4777_vm3, %v4778_v14  ;;  %v3246_v52 = vld [vmem:[%s5753_s4 + $0x1d0] sm:$0xff] }
 0x5c0   :  { %4496 = vmatprep.subr.bf16.mxu0 %v4776_v11  ;;  %v4596_v54 = vpack.c.bf16 %v3247_v53, %v3246_v52 }
 0x5c2   :  { %3976 = vmatmul.mubr.msk.f32.vlgmr.msra.gmra.mrb[20].mxu0 %vm1223_vm2, %v3199_v55  ;;  %v3249_v55 = vld [vmem:[%s5753_s4 + $0x1e8] sm:$0xff] }
 0x5c3   :  { %4498 = vmatpush3.bf16.msra.mxu0 %v4497_v56  ;;  %4010 = vmatprep.mubr.msk.f32.mxu0 %vm4777_vm3, %v4778_v14 }
 0x5c4   :  { %4499 = vmatprep.subr.bf16.mxu0 %v4776_v11 }
 0x5c7   :  { %4501 = vmatpush3.bf16.msra.mxu0 %v4500_v59 }
 0x5c8   :  { %4502 = vmatprep.subr.bf16.mxu0 %v4776_v11 }
 0x5cb   :  { %4504 = vmatpush3.bf16.msra.mxu0 %v4503_v62 }
 0x5cc   :  { %4505 = vmatprep.subr.bf16.mxu0 %v4776_v11 }
 0x5cf   :  { %4507 = vmatpush3.bf16.msra.mxu0 %v4506_v1 }
 0x5d0   :  { %4508 = vmatprep.subr.bf16.mxu0 %v4776_v11 }
 0x5d3   :  { %4510 = vmatpush3.bf16.msra.mxu0 %v4509_v4 }
 0x5d4   :  { %4511 = vmatprep.subr.bf16.mxu0 %v4776_v11 }
 0x5d7   :  { %4513 = vmatpush3.bf16.msra.mxu0 %v4512_v9 }
 0x5d8   :  { %4514 = vmatprep.subr.bf16.mxu0 %v4776_v11 }
 0x5db   :  { %4516 = vmatpush3.bf16.msra.mxu0 %v4515_v13 }
 0x5dc   :  { %4517 = vmatprep.subr.bf16.mxu0 %v4776_v11 }
 0x5df   :  { %4519 = vmatpush3.bf16.msra.mxu0 %v4518_v5 }
 0x5e0   :  { %4544 = vmatprep.subr.bf16.mxu0 %v4776_v11 }
 0x691   :  { %v1823_v8 = vpop.f32.mrb[18].mxu0 }
 0x692   :  { %v3970_v17 = vpop.f32.mrb[19].mxu0  ;;  %4011 = vmatmul.mubr.f32.vlgmr.msra.gmra.mrb[22].mxu0 %v1823_v8  ;;  %4046 = vmatmul.mubr.f32.vlgmr.msra.gmra.mrb[18].mxu1 %v1823_v8  ;;  %v3260_v8 = vld [vmem:[%s5753_s4 + $0x220] sm:$0xff] }
 0x693   :  { %4546 = vmatpush3.bf16.msra.mxu0 %v4497_v56  ;;  %4570 = vmatpush3.bf16.msra.mxu1 %v5309_v19  ;;  %v3234_v19 = vld [vmem:[%s5753_s4 + $0x180] sm:$0xff]  ;;  %v4599_v56 = vpack.c.bf16 %v3249_v55, %v3248_v30  ;;  %v3261_v17 = vld [vmem:[%s5753_s4 + $0x228] sm:$0xff]  ;;  %v2865_v55 = vld [vmem:[%s5758_s9 + $0x50] sm:$0xff] }
 0x694   :  { %4547 = vmatprep.subr.bf16.mxu0 %v4776_v11  ;;  %4571 = vmatprep.subr.bf16.mxu1 %v4776_v11  ;;  %v2863_v30 = vld [vmem:[%s5758_s9 + $0x40] sm:$0xff] }
 0x695   :  { %v1898_v18 = vpop.f32.mrb[20].mxu0  ;;  %4080 = vmatprep.mubr.msk.f32.mxu0 %vm4777_vm3, %v4778_v14  ;;  %4115 = vmatprep.mubr.msk.f32.mxu1 %vm4777_vm3, %v4778_v14 }
 0x696   :  { %v3977_v20 = vpop.f32.mrb[21].mxu0 }
 0x697   :  { %4549 = vmatpush3.bf16.msra.mxu0 %v4500_v59  ;;  %4573 = vmatpush3.bf16.msra.mxu1 %v5319_v22  ;;  %v4605_v22 = vpack.c.bf16 %v3235_v21, %v3234_v19  ;;  %v4602_v59 = vpack.c.bf16 %v3251_v58, %v3250_v57  ;;  %v3271_v20 = vld [vmem:[%s5753_s4 + $0x260] sm:$0xff]  ;;  %v3272_v19 = vld [vmem:[%s5753_s4 + $0x268] sm:$0xff]  ;;  %v2870_v57 = vld [vmem:[%s5758_s9 + $0x78] sm:$0xff] }
 0x698   :  { %4550 = vmatprep.subr.bf16.mxu0 %v4776_v11  ;;  %4574 = vmatprep.subr.bf16.mxu1 %v4776_v11  ;;  %v4635_v21 = vpack.c.bf16 %v3272_v19, %v3271_v20  ;;  %v2886_v20 = vld [vmem:[%s5758_s9 + $0xf8] sm:$0xff] }
 0x69b   :  { %4552 = vmatpush3.bf16.msra.mxu0 %v4503_v62  ;;  %4576 = vmatpush3.bf16.msra.mxu1 %v5329_v25  ;;  %v4608_v25 = vpack.c.bf16 %v3237_v24, %v3236_v23  ;;  %v3268_v62 = vld [vmem:[%s5753_s4 + $0x248] sm:$0xff]  ;;  %v3263_v23 = vld [vmem:[%s5753_s4 + $0x238] sm:$0xff] }
 0x69c   :  { %4553 = vmatprep.subr.bf16.mxu0 %v4776_v11  ;;  %4577 = vmatprep.subr.bf16.mxu1 %v4776_v11  ;;  %v4629_v3 = vpack.c.bf16 %v3268_v62, %v3267_v61  ;;  %v2872_v61 = vld [vmem:[%s5758_s9 + $0x88] sm:$0xff]  ;;  %v2874_v62 = vld [vmem:[%s5758_s9 + $0x98] sm:$0xff] }
 0x69f   :  { %4555 = vmatpush3.bf16.msra.mxu0 %v4506_v1  ;;  %4579 = vmatpush3.bf16.msra.mxu1 %v5339_v31  ;;  %v4611_v31 = vpack.c.bf16 %v3239_v27, %v3238_v26  ;;  %v3256_v1 = vld [vmem:[%s5753_s4 + $0x200] sm:$0xff]  ;;  %v3274_v26 = vld [vmem:[%s5753_s4 + $0x278] sm:$0xff] }
 0x6a0   :  { %4556 = vmatprep.subr.bf16.mxu0 %v4776_v11  ;;  %4580 = vmatprep.subr.bf16.mxu1 %v4776_v11  ;;  %v4617_v12 = vpack.c.bf16 %v3257_v2, %v3256_v1  ;;  %v2871_v1 = vld [vmem:[%s5758_s9 + $0x80] sm:$0xff]  ;;  %v2873_v2 = vld [vmem:[%s5758_s9 + $0x90] sm:$0xff] }
 0x6a1   :  { %v4658_v6 = vpack.c.bf16 %v2873_v2, %v2871_v1  ;;  %v2851_v2 = vsub.s32 2, %v5109_v28 }
 0x6a3   :  { %4558 = vmatpush3.bf16.msra.mxu0 %v4509_v4  ;;  %4582 = vmatpush3.bf16.msra.mxu1 %v5349_v34  ;;  %v4614_v34 = vpack.c.bf16 %v3241_v33, %v3240_v32  ;;  %v2858_v32 = vld [vmem:[%s5758_s9 + $0x18] sm:$0xff] }
 0x6a4   :  { %4559 = vmatprep.subr.bf16.mxu0 %v4776_v11  ;;  %4583 = vmatprep.subr.bf16.mxu1 %v4776_v11 }
 0x6a7   :  { %4561 = vmatpush3.bf16.msra.mxu0 %v4512_v9  ;;  %4585 = vmatpush3.bf16.msra.mxu1 %v5359_v37 }
 0x6a8   :  { %4562 = vmatprep.subr.bf16.mxu0 %v4776_v11  ;;  %4586 = vmatprep.subr.bf16.mxu1 %v4776_v11 }
 0x6ab   :  { %4564 = vmatpush3.bf16.msra.mxu0 %v4515_v13  ;;  %4588 = vmatpush3.bf16.msra.mxu1 %v5369_v40  ;;  %v3258_v13 = vld [vmem:[%s5753_s4 + $0x210] sm:$0xff] }
 0x6ac   :  { %4565 = vmatprep.subr.bf16.mxu0 %v4776_v11  ;;  %4589 = vmatprep.subr.bf16.mxu1 %v4776_v11 }
 0x6af   :  { %4567 = vmatpush3.bf16.msra.mxu0 %v4518_v5  ;;  %4591 = vmatpush3.bf16.msra.mxu1 %v5379_v43  ;;  %v4620_v5 = vpack.c.bf16 %v3259_v15, %v3258_v13  ;;  %v2880_v13 = vld [vmem:[%s5758_s9 + $0xc8] sm:$0xff]  ;;  %v2882_v15 = vld [vmem:[%s5758_s9 + $0xd8] sm:$0xff] }
 0x6b0   :  { %4118 = vmatprep.subr.mxu0 %v4778_v14  ;;  %4604 = vmatprep.subr.bf16.mxu1 %v4776_v11 }
 0x6b2   :  { %4081 = vmatmul.mubr.f32.vlgmr.msra.gmra.mrb[24].mxu0 %v1898_v18  ;;  %4116 = vmatmul.mubr.f32.vlgmr.msra.gmra.mrb[20].mxu1 %v1898_v18  ;;  %v4623_v18 = vpack.c.bf16 %v3261_v17, %v3260_v8  ;;  %v2881_v8 = vld [vmem:[%s5758_s9 + $0xd0] sm:$0xff] }
 0x6b3   :  { %4120 = vmatprep.mubr.msk.f32.mxu0 %vm4777_vm3, %v4778_v14  ;;  %4163 = vmatprep.mubr.msk.f32.mxu1 %vm4777_vm3, %v4778_v14 }
 0x6b4   :  { %4606 = vmatpush3.bf16.msra.mxu1 %v4605_v22  ;;  %v3262_v22 = vld [vmem:[%s5753_s4 + $0x230] sm:$0xff] }
 0x6b5   :  { %4607 = vmatprep.subr.bf16.mxu1 %v4776_v11  ;;  %v4626_v24 = vpack.c.bf16 %v3263_v23, %v3262_v22  ;;  %v2885_v22 = vld [vmem:[%s5758_s9 + $0xf0] sm:$0xff] }
 0x6b8   :  { %4609 = vmatpush3.bf16.msra.mxu1 %v4608_v25  ;;  %v3273_v25 = vld [vmem:[%s5753_s4 + $0x270] sm:$0xff] }
 0x6b9   :  { %4610 = vmatprep.subr.bf16.mxu1 %v4776_v11  ;;  %v4638_v27 = vpack.c.bf16 %v3274_v26, %v3273_v25  ;;  %v2989_v25 = vld [vmem:[#allocation4 + $0x88] sm:$0xff]  ;;  %v2972_v26 = vld [vmem:[#allocation4] sm:$0xff] }
 0x6bc   :  { %4612 = vmatpush3.bf16.msra.mxu1 %v4611_v31  ;;  %v2856_v31 = vld [vmem:[%s5758_s9 + $0x8] sm:$0xff] }
 0x6bd   :  { %4613 = vmatprep.subr.bf16.mxu1 %v4776_v11 }
 0x6c0   :  { %4615 = vmatpush3.bf16.msra.mxu1 %v4614_v34 }
 0x6c1   :  { %4190 = vmatprep.subr.mxu1 %v4778_v14 }
 0x765   :  { %v1985_v35 = vpop.f32.mrb[22].mxu0  ;;  %v2072_v36 = vpop.f32.mrb[18].mxu1 }
 0x766   :  { %v2076_v37 = vmax.f32 %v1985_v35, %v2072_v36  ;;  %v4012_v38 = vpop.f32.mrb[23].mxu0  ;;  %v4047_v39 = vpop.f32.mrb[19].mxu1  ;;  %v2855_v35 = vld [vmem:[%s5758_s9] sm:$0xff]  ;;  %v2857_v36 = vld [vmem:[%s5758_s9 + $0x10] sm:$0xff] }
 0x767   :  { %v2860_v39 = vld [vmem:[%s5758_s9 + $0x28] sm:$0xff] }
 0x785   :  { %v2143_v40 = vpop.f32.mrb[24].mxu0  ;;  %v2213_v41 = vpop.f32.mrb[20].mxu1 }
 0x786   :  { %v2217_v42 = vmax.f32 %v2143_v40, %v2213_v41  ;;  %v4082_v43 = vpop.f32.mrb[25].mxu0  ;;  %v4117_v45 = vpop.f32.mrb[21].mxu1  ;;  %v2862_v40 = vld [vmem:[%s5758_s9 + $0x38] sm:$0xff] }
 0x787   :  { %v4642_v45 = vpack.c.bf16 %v2857_v36, %v2855_v35  ;;  %v2974_v35 = vld [vmem:[#allocation4 + $0x10] sm:$0xff]  ;;  %v2975_v36 = vld [vmem:[#allocation4 + $0x18] sm:$0xff] }
 0x788   :  { %v2218_v46 = vmax.f32 %v2076_v37, %v2217_v42 }
 0x78a   :  { %4119 = vmatpush3.msra.mxu0 %v2218_v46 }
 0x78b   :  { %4121 = vmatmul.mubr.msk.f32.vlgmr.msra.gmra.mrb[26].mxu0 %vm2220_vm4, %v2219_v47  ;;  %4123 = vmatprep.subr.mxu0 %v4778_v14  ;;  %v2859_v47 = vld [vmem:[%s5758_s9 + $0x20] sm:$0xff] }
 0x78c   :  { %4124 = vmatpush3.msra.mxu0 %v2218_v46  ;;  %4125 = vmatprep.mubr.msk.f32.mxu0 %vm4777_vm3, %v4778_v14  ;;  %v4646_v53 = vpack.c.bf16 %v2861_v48, %v2859_v47 }
 0x78d   :  { %4592 = vmatprep.subr.bf16.mxu0 %v4776_v11 }
 0x78f   :  { %4126 = vmatmul.mubr.msk.f32.vlgmr.msra.gmra.mrb[28].mxu0 %vm2220_vm4, %v3242_v50  ;;  %v2864_v50 = vld [vmem:[%s5758_s9 + $0x48] sm:$0xff] }
 0x790   :  { %4594 = vmatpush3.bf16.msra.mxu0 %v4593_v51  ;;  %4144 = vmatprep.mubr.msk.f32.mxu0 %vm4777_vm3, %v4778_v14  ;;  %v2866_v51 = vld [vmem:[%s5758_s9 + $0x58] sm:$0xff] }
 0x791   :  { %4595 = vmatprep.subr.bf16.mxu0 %v4776_v11 }
 0x794   :  { %4597 = vmatpush3.bf16.msra.mxu0 %v4596_v54  ;;  %v4648_v54 = vpack.c.bf16 %v2866_v51, %v2864_v50  ;;  %v2979_v50 = vld [vmem:[#allocation4 + $0x38] sm:$0xff]  ;;  %v2996_v51 = vld [vmem:[#allocation4 + $0xc0] sm:$0xff] }
 0x795   :  { %4598 = vmatprep.subr.bf16.mxu0 %v4776_v11 }
 0x798   :  { %4600 = vmatpush3.bf16.msra.mxu0 %v4599_v56  ;;  %v2868_v56 = vld [vmem:[%s5758_s9 + $0x68] sm:$0xff] }
 0x799   :  { %4601 = vmatprep.subr.bf16.mxu0 %v4776_v11  ;;  %v4652_v58 = vpack.c.bf16 %v2870_v57, %v2868_v56  ;;  %v2998_v56 = vld [vmem:[#allocation4 + $0xd0] sm:$0xff]  ;;  %v2999_v57 = vld [vmem:[#allocation4 + $0xd8] sm:$0xff] }
 0x79c   :  { %4603 = vmatpush3.bf16.msra.mxu0 %v4602_v59  ;;  %v2867_v59 = vld [vmem:[%s5758_s9 + $0x60] sm:$0xff] }
 0x79d   :  { %4166 = vmatprep.subr.mxu0 %v4778_v14 }
 0x85e   :  { %v2290_v60 = vpop.f32.mrb[26].mxu0 }
 0x85f   :  { %4164 = vmatmul.mubr.msk.f32.vlgmr.msra.gmra.mrb[22].mxu1 %vm296_vm1, %v2290_v60  ;;  %v4122_v63 = vpop.f32.mrb[27].mxu0  ;;  %v2869_v60 = vld [vmem:[%s5758_s9 + $0x70] sm:$0xff] }
 0x860   :  { %4191 = vmatpush3.msra.mxu1 %v2218_v46  ;;  %4192 = vmatprep.mubr.msk.f32.mxu1 %vm4777_vm3, %v4778_v14  ;;  %v4654_v63 = vpack.c.bf16 %v2869_v60, %v2867_v59  ;;  %v2982_v59 = vld [vmem:[#allocation4 + $0x50] sm:$0xff]  ;;  %v2983_v60 = vld [vmem:[#allocation4 + $0x58] sm:$0xff] }
 0x861   :  { %4628 = vmatprep.subr.bf16.mxu1 %v4776_v11 }
 0x862   :  { %v2374_v4 = vpop.f32.mrb[28].mxu0 }
 0x863   :  { %4145 = vmatmul.mubr.msk.f32.vlgmr.msra.gmra.mrb[30].mxu0 %vm296_vm1, %v2374_v4  ;;  %v4127_v9 = vpop.f32.mrb[29].mxu0  ;;  %4193 = vmatmul.mubr.msk.f32.vlgmr.msra.gmra.mrb[24].mxu1 %vm2220_vm4, %v3265_v0  ;;  %v4656_v0 = vpack.c.bf16 %v2874_v62, %v2872_v61  ;;  %v2878_v4 = vld [vmem:[%s5758_s9 + $0xb8] sm:$0xff]  ;;  %v3000_v61 = vld [vmem:[#allocation4 + $0xe0] sm:$0xff]  ;;  %v3001_v62 = vld [vmem:[#allocation4 + $0xe8] sm:$0xff] }
 0x864   :  { %4167 = vmatpush3.msra.mxu0 %v2218_v46  ;;  %4168 = vmatprep.mubr.msk.f32.mxu0 %vm4777_vm3, %v4778_v14  ;;  %v4644_v46 = vpack.c.bf16 %v2862_v40, %v2860_v39  ;;  %v2875_v9 = vld [vmem:[%s5758_s9 + $0xa0] sm:$0xff]  ;;  %v4678_v39 = vpack.c.bf16 %v2975_v36, %v2974_v35 }
 0x865   :  { %4616 = vmatprep.subr.bf16.mxu0 %v4776_v11  ;;  %4630 = vmatpush3.bf16.msra.mxu1 %v4629_v3  ;;  %v2876_v3 = vld [vmem:[%s5758_s9 + $0xa8] sm:$0xff] }
 0x866   :  { %4631 = vmatprep.subr.bf16.mxu1 %v4776_v11  ;;  %4211 = vmatprep.mubr.msk.f32.mxu1 %vm4777_vm3, %v4778_v14  ;;  %v4660_v7 = vpack.c.bf16 %v2878_v4, %v2876_v3 }
 0x867   :  { %4169 = vmatmul.mubr.msk.f32.vlgmr.msra.gmra.mrb[32].mxu0 %vm2220_vm4, %v3254_v10  ;;  %v2877_v10 = vld [vmem:[%s5758_s9 + $0xb0] sm:$0xff] }
 0x868   :  { %4618 = vmatpush3.bf16.msra.mxu0 %v4617_v12  ;;  %4187 = vmatprep.mubr.msk.f32.mxu0 %vm4777_vm3, %v4778_v14  ;;  %v4662_v12 = vpack.c.bf16 %v2877_v10, %v2875_v9 }
 0x869   :  { %4619 = vmatprep.subr.bf16.mxu0 %v4776_v11  ;;  %4633 = vmatpush3.bf16.msra.mxu1 %v4632_v16  ;;  %v4664_v16 = vpack.c.bf16 %v2882_v15, %v2880_v13 }
 0x86a   :  { %4634 = vmatprep.subr.bf16.mxu1 %v4776_v11 }
 0x86c   :  { %4621 = vmatpush3.bf16.msra.mxu0 %v4620_v5  ;;  %v2879_v5 = vld [vmem:[%s5758_s9 + $0xc0] sm:$0xff] }
 0x86d   :  { %4622 = vmatprep.subr.bf16.mxu0 %v4776_v11  ;;  %4636 = vmatpush3.bf16.msra.mxu1 %v4635_v21  ;;  %v4666_v17 = vpack.c.bf16 %v2881_v8, %v2879_v5  ;;  %v2883_v21 = vld [vmem:[%s5758_s9 + $0xe0] sm:$0xff]  ;;  %v2985_v5 = vld [vmem:[#allocation4 + $0x68] sm:$0xff] }
 0x86e   :  { %4637 = vmatprep.subr.bf16.mxu1 %v4776_v11  ;;  %v4670_v23 = vpack.c.bf16 %v2885_v22, %v2883_v21  ;;  %v2987_v21 = vld [vmem:[#allocation4 + $0x78] sm:$0xff] }
 0x86f   :  { %v2887_v22 = vld [vmem:[#allocation2] sm:$0x3] }
 0x870   :  { %4624 = vmatpush3.bf16.msra.mxu0 %v4623_v18  ;;  %v2884_v18 = vld [vmem:[%s5758_s9 + $0xe8] sm:$0xff] }
 0x871   :  { %4625 = vmatprep.subr.bf16.mxu0 %v4776_v11  ;;  %4639 = vmatpush3.bf16.msra.mxu1 %v4638_v27  ;;  %v4640_v11 = vpack.c.bf16 %v2858_v32, %v2856_v31  ;;  %v4668_v19 = vpack.c.bf16 %v2886_v20, %v2884_v18  ;;  %v2973_v31 = vld [vmem:[#allocation4 + $0x8] sm:$0xff]  ;;  %v2990_v32 = vld [vmem:[#allocation4 + $0x90] sm:$0xff]  ;;  %v3003_v18 = vld [vmem:[#allocation4 + $0xf8] sm:$0xff] }
 0x874   :  { %4627 = vmatpush3.bf16.msra.mxu0 %v4626_v24  ;;  %v2988_v24 = vld [vmem:[#allocation4 + $0x80] sm:$0xff] }
 0x875   :  { %4641 = vmatprep.subr.bf16.mxu0 %v4640_v11  ;;  %v4672_v27 = vpack.c.bf16 %v2989_v25, %v2988_v24  ;;  %v2991_v11 = vld [vmem:[#allocation4 + $0x98] sm:$0xff]  ;;  %v2896_v24 = vrot.slane %v2887_v22, %v1747_v44 }
 0x877   :  { %4673 = vmatprep.subr.bf16.mxu1 %v4672_v27 }
 0x932   :  { %v2529_v33 = vpop.f32.mrb[22].mxu1 }
 0x933   :  { %v4165_v34 = vpop.f32.mrb[23].mxu1 }
 0x934   :  { %v4676_v34 = vpack.c.bf16 %v2991_v11, %v2990_v32 }
 0x936   :  { %v2456_v37 = vpop.f32.mrb[30].mxu0  ;;  %v2762_v38 = vpop.f32.mrb[24].mxu1 }
 0x937   :  { %v5651_v41 = vadd.f32 %v2529_v33, %v2456_v37  ;;  %v4146_v42 = vpop.f32.mrb[31].mxu0  ;;  %4212 = vmatmul.mubr.msk.f32.vlgmr.msra.gmra.mrb[26].mxu1 %vm296_vm1, %v2762_v38  ;;  %v4194_v43 = vpop.f32.mrb[25].mxu1  ;;  %v4674_v33 = vpack.c.bf16 %v2973_v31, %v2972_v26  ;;  %v2992_v37 = vld [vmem:[#allocation4 + $0xa0] sm:$0xff]  ;;  %v2993_v38 = vld [vmem:[#allocation4 + $0xa8] sm:$0xff] }
 0x938   :  { %v4680_v40 = vpack.c.bf16 %v2993_v38, %v2992_v37  ;;  %v2976_v42 = vld [vmem:[#allocation4 + $0x20] sm:$0xff]  ;;  %v2977_v43 = vld [vmem:[#allocation4 + $0x28] sm:$0xff] }
 0x939   :  { %4675 = vmatpush3.bf16.msra.mxu1 %v4674_v33  ;;  %v4682_v47 = vpack.c.bf16 %v2977_v43, %v2976_v42 }
 0x93a   :  { %v2604_v49 = vpop.f32.mrb[32].mxu0  ;;  %4677 = vmatprep.subr.bf16.mxu1 %v4676_v34  ;;  %v3276_v34 = vld [vmem:[%s5761_s12] ss:$0 sm:$0xff] }
 0x93b   :  { %4188 = vmatmul.mubr.msk.f32.vlgmr.msra.gmra.mrb[34].mxu0 %vm296_vm1, %v2604_v49  ;;  %v4170_v52 = vpop.f32.mrb[33].mxu0  ;;  %v2978_v49 = vld [vmem:[#allocation4 + $0x30] sm:$0xff] }
 0x93c   :  { %4643 = vmatpush1.bf16.msra.mxu0 %v4642_v45  ;;  %2963 = vmatprep.mubr.f32.mxu0 %v4778_v14  ;;  %v4650_v14 = vpack.c.bf16 %v2865_v55, %v2863_v30  ;;  %v2994_v45 = vld [vmem:[#allocation4 + $0xb0] sm:$0xff]  ;;  %v2997_v52 = vld [vmem:[#allocation4 + $0xc8] sm:$0xff]  ;;  %v2980_v30 = vld [vmem:[#allocation4 + $0x40] sm:$0xff] }
 0x93d   :  { %4645 = vmatprep.subr.bf16.mxu0 %v4644_v46  ;;  %v2995_v46 = vld [vmem:[#allocation4 + $0xb8] sm:$0xff]  ;;  %4679 = vmatpush3.bf16.msra.mxu1 %v4678_v39  ;;  %v2981_v55 = vld [vmem:[#allocation4 + $0x48] sm:$0xff] }
 0x93e   :  { %4681 = vmatprep.subr.bf16.mxu1 %v4680_v40  ;;  %v4684_v48 = vpack.c.bf16 %v2995_v46, %v2994_v45 }
 0x940   :  { %4647 = vmatpush1.bf16.msra.mxu0 %v4646_v53  ;;  %v4686_v53 = vpack.c.bf16 %v2979_v50, %v2978_v49 }
 0x941   :  { %4649 = vmatprep.subr.bf16.mxu0 %v4648_v54  ;;  %4683 = vmatpush3.bf16.msra.mxu1 %v4682_v47  ;;  %v4688_v54 = vpack.c.bf16 %v2997_v52, %v2996_v51 }
 0x942   :  { %4685 = vmatprep.subr.bf16.mxu1 %v4684_v48 }
 0x944   :  { %4651 = vmatpush1.bf16.msra.mxu0 %v4650_v14  ;;  %v4690_v14 = vpack.c.bf16 %v2981_v55, %v2980_v30 }
 0x945   :  { %4653 = vmatprep.subr.bf16.mxu0 %v4652_v58  ;;  %4687 = vmatpush3.bf16.msra.mxu1 %v4686_v53  ;;  %v4692_v58 = vpack.c.bf16 %v2999_v57, %v2998_v56 }
 0x946   :  { %4689 = vmatprep.subr.bf16.mxu1 %v4688_v54 }
 0x948   :  { %4655 = vmatpush1.bf16.msra.mxu0 %v4654_v63  ;;  %v4694_v63 = vpack.c.bf16 %v2983_v60, %v2982_v59 }
 0x949   :  { %4657 = vmatprep.subr.bf16.mxu0 %v4656_v0  ;;  %4691 = vmatpush3.bf16.msra.mxu1 %v4690_v14  ;;  %v4696_v0 = vpack.c.bf16 %v3001_v62, %v3000_v61 }
 0x94a   :  { %4693 = vmatprep.subr.bf16.mxu1 %v4692_v58 }
 0x94c   :  { %4659 = vmatpush1.bf16.msra.mxu0 %v4658_v6 }
 0x94d   :  { %4661 = vmatprep.subr.bf16.mxu0 %v4660_v7  ;;  %4695 = vmatpush3.bf16.msra.mxu1 %v4694_v63  ;;  %v4723_v7 = vld [vmem:[%s5754_s5] sm:$0x7] }
 0x94e   :  { %4697 = vmatprep.subr.bf16.mxu1 %v4696_v0  ;;  %v2852_v9 = vrot.slane %v4723_v7, %v2851_v2 }
 0x950   :  { %4663 = vmatpush1.bf16.msra.mxu0 %v4662_v12 }
 0x951   :  { %4665 = vmatprep.subr.bf16.mxu0 %v4664_v16  ;;  %v2984_v16 = vld [vmem:[#allocation4 + $0x60] sm:$0xff] }
 0x952   :  { %v4698_v8 = vpack.c.bf16 %v2985_v5, %v2984_v16 }
 0x954   :  { %4667 = vmatpush1.bf16.msra.mxu0 %v4666_v17  ;;  %4699 = vmatpush3.bf16.msra.mxu1 %v4698_v8  ;;  %v3002_v17 = vld [vmem:[#allocation4 + $0xf0] sm:$0xff] }
 0x955   :  { %4669 = vmatprep.subr.bf16.mxu0 %v4668_v19  ;;  %v4700_v20 = vpack.c.bf16 %v3003_v18, %v3002_v17  ;;  %v2986_v19 = vld [vmem:[#allocation4 + $0x70] sm:$0xff] }
 0x957   :  { %4701 = vmatprep.subr.bf16.mxu1 %v4700_v20 }
 0x958   :  { %4671 = vmatpush1.bf16.msra.mxu0 %v4670_v23  ;;  %v2892_v23 = vrot.slane %v2887_v22, %v705_v29 }
 0xa0a   :  { %v2844_v1 = vpop.f32.mrb[26].mxu1 }
 0xa0b   :  { %v4213_v3 = vpop.f32.mrb[27].mxu1 }
 0xa0e   :  { %v2686_v4 = vpop.f32.mrb[34].mxu0 }
 0xa0f   :  { %v2690_v6 = vadd.f32 %v2686_v4, %v5651_v41  ;;  %v4189_v10 = vpop.f32.mrb[35].mxu0  ;;  %v4702_v41 = vpack.c.bf16 %v2987_v21, %v2986_v19 }
 0xa11   :  { %v2848_v12 = vadd.f32 %v2844_v1, %v2690_v6  ;;  %4703 = vmatpush3.bf16.msra.mxu1 %v4702_v41 }
 0xa13   :  { %v2853_v13 = vadd.f32 %v2852_v9, %v2848_v12 }
 0xa15   :  { %v2854_v15 = vmax.f32 %v2853_v13, 0.0 }
 0xa17   :  { %2964 = vmatmul.mubr.f32.vlgmr.msra.gmra.mrb[36].mxu0 %v2854_v15 }
 0xaea   :  { %v2965_v25 = vpop.f32.mrb[36].mxu0 }
 0xaeb   :  { %v2966_v26 = vadd.f32 %v2965_v25, %v2892_v23  ;;  %v2967_v27 = vpop.f32.mrb[37].mxu0 }
 0xaec   :  { %v2968_v31 = vadd.f32 %v2967_v27, %v2896_v24 }
 0xaed   :  { %v2970_v11 = vmax.f32 %v2966_v26, 0.0 }
 0xaee   :  { %v2971_v32 = vmax.f32 %v2968_v31, 0.0 }
 0xaf0   :  { %3075 = vmatprep.mubr.f32.mxu1 %v2971_v32 }
 0xaf1   :  { %3076 = vmatmul.mubr.f32.vlgmr.msra.gmra.mrb[28].mxu1 %v2970_v11 }
 0xbc4   :  { %v3613_v33 = vpop.f32.mrb[28].mxu1 }
 0xbc5   :  { %v3614_v35 = vpop.f32.mrb[29].mxu1 }
 0xbc6   :  { %v3615_v36 = vadd.f32 %v3614_v35, %v3613_v33 }
 0xbc8   :  { %v3078_v37 = vadd.f32 %v3615_v36, %v3276_v34 }
 0xbca   :  { %3081 = vst [vmem:[%s5762_s13] sm:$0x3] %v3078_v37 }
 0xbcb   :  { %3086 = vsyncpa [#allocation3], 1 }
 0xbcc   :  { %3087 = vsyncpa [#allocation5], 1 }

</bundles_post_ra>
